<compile_context>
chip_gen: v6e
topology: v6e:2x2x1
jax: 0.10.0
libtpu: 0.0.40
codegen_flags: <defaults>
</compile_context>

<pallas_src>
import functools

import jax
import jax.numpy as jnp
import numpy as np
from jax.experimental import pallas as pl
from jax.experimental.pallas import tpu as pltpu


# ----------------------------------------------------------------------------
# Kernel bodies
# ----------------------------------------------------------------------------
def _unet_stack(x, we0_ref, be0_ref, wf_ref, bf_ref, wd1_ref, bd1_ref, out_ref,
                num_blocks):
    """Runs num_blocks fused Unet blocks on one (TB, Dp) activation tile."""
    for blk in range(num_blocks):                       # static unroll (small)
        h0 = jnp.dot(x, we0_ref[blk], preferred_element_type=jnp.float32) + be0_ref[blk]
        h0 = jnp.maximum(h0, 0.0)                       # relu (not last enc layer)
        # Fused bottleneck: relu(h0 @ (2*We1@Wd0) + (2*be1@Wd0 + bd0))
        d0 = jnp.dot(h0, wf_ref[blk], preferred_element_type=jnp.float32) + bf_ref[blk]
        d0 = jnp.maximum(d0, 0.0)                       # relu (not last dec layer)
        d1 = jnp.dot(d0 + h0, wd1_ref[blk], preferred_element_type=jnp.float32) + bd1_ref[blk]
        x = jax.nn.sigmoid(d1) + x                      # Unet residual
    out_ref[...] = x


def sunet_kernel(x_ref, we0_ref, be0_ref, wf_ref, bf_ref, wd1_ref, bd1_ref,
                 out_ref, *, num_blocks):
    # dropout == 0.0 specialization: no noise input at all.
    _unet_stack(x_ref[...], we0_ref, be0_ref, wf_ref, bf_ref, wd1_ref, bd1_ref,
                out_ref, num_blocks)


def sunet_kernel_noise(x_ref, noise_ref, we0_ref, be0_ref, wf_ref, bf_ref,
                       wd1_ref, bd1_ref, out_ref, *, num_blocks):
    _unet_stack(x_ref[...] * noise_ref[...], we0_ref, be0_ref, wf_ref, bf_ref,
                wd1_ref, bd1_ref, out_ref, num_blocks)


# ----------------------------------------------------------------------------
# Wrapper: param folding / padding / tiling
# ----------------------------------------------------------------------------
def _round_up(n, m):
    return ((n + m - 1) // m) * m


def _pad2(a, rows, cols):
    return jnp.pad(a, ((0, rows - a.shape[0]), (0, cols - a.shape[1])))


def _prepare_block_params(block_params_list):
    """Fold (We1, Wd0) into one matrix, zero-pad all dims to 128-lane multiples,
    and stack across blocks -> (NB, ...) arrays."""
    we0s, be0s, wfs, bfs, wd1s, bd1s = [], [], [], [], [], []
    for pblock in block_params_list:
        (we0, be0), (we1, be1), (wd0, bd0), (wd1, bd1) = pblock
        D, H1 = we0.shape
        Dp, H1p = _round_up(D, 128), _round_up(H1, 128)
        # Algebraic fusion of the K=16 bottleneck (exact in real arithmetic):
        #   (z + z) @ Wd0 + bd0 = h0 @ (2*We1@Wd0) + (2*be1@Wd0 + bd0)
        wf = 2.0 * (we1 @ wd0)                    # (H1, H1)
        bf = 2.0 * (be1 @ wd0) + bd0              # (1, H1)
        we0s.append(_pad2(we0, Dp, H1p))
        be0s.append(_pad2(be0, 1, H1p))
        wfs.append(_pad2(wf, H1p, H1p))
        bfs.append(_pad2(bf, 1, H1p))
        wd1s.append(_pad2(wd1, H1p, Dp))
        bd1s.append(_pad2(bd1, 1, Dp))
    return (jnp.stack(we0s), jnp.stack(be0s), jnp.stack(wfs),
            jnp.stack(bfs), jnp.stack(wd1s), jnp.stack(bd1s))


def sunet_forward(x, block_params_list, dropout=0.0, noise_key=None,
                  batch_tile=256):
    """SUnet_module forward. x: (B, D) float32. Returns (out, noise)."""
    B, D = x.shape
    nb = len(block_params_list)
    we0, be0, wf, bf, wd1, bd1 = _prepare_block_params(block_params_list)
    Dp = we0.shape[1]

    # Batch tile: big enough to feed the MXU, 8-row aligned, padded to a multiple.
    tb = min(batch_tile, _round_up(B, 8))
    Bp = _round_up(B, tb)
    xp = jnp.pad(x, ((0, Bp - B), (0, Dp - D)))

    grid = (Bp // tb,)
    act_in_spec = pl.BlockSpec((tb, Dp), lambda i: (i, 0))
    act_out_spec = pl.BlockSpec((tb, Dp), lambda i: (i, 0))
    # Weights/biases: constant index_map -> fetched once, resident across the grid.
    w_specs = [
        pl.BlockSpec(we0.shape, lambda i: (0, 0, 0)),
        pl.BlockSpec(be0.shape, lambda i: (0, 0, 0)),
        pl.BlockSpec(wf.shape, lambda i: (0, 0, 0)),
        pl.BlockSpec(bf.shape, lambda i: (0, 0, 0)),
        pl.BlockSpec(wd1.shape, lambda i: (0, 0, 0)),
        pl.BlockSpec(bd1.shape, lambda i: (0, 0, 0)),
    ]
    cparams = pltpu.CompilerParams(
        dimension_semantics=("parallel",),
        vmem_limit_bytes=32 * 1024 * 1024,
    )

    if dropout == 0.0:
        noise = jnp.ones((B, D), x.dtype)
        out_p = pl.pallas_call(
            functools.partial(sunet_kernel, num_blocks=nb),
            out_shape=jax.ShapeDtypeStruct((Bp, Dp), x.dtype),
            grid=grid,
            in_specs=[act_in_spec] + w_specs,
            out_specs=act_out_spec,
            compiler_params=cparams,
        )(xp, we0, be0, wf, bf, wd1, bd1)
    else:
        # TODO(synk): generate the Bernoulli mask in-kernel with pltpu.prng_seed /
        # pltpu.prng_random_bits to avoid the extra (B, D) HBM read.
        if noise_key is None:
            noise_key = jax.random.PRNGKey(0)
        noise = jax.random.bernoulli(noise_key, 1.0 - dropout, (B, D)).astype(x.dtype)
        noise_p = jnp.pad(noise, ((0, Bp - B), (0, Dp - D)))
        out_p = pl.pallas_call(
            functools.partial(sunet_kernel_noise, num_blocks=nb),
            out_shape=jax.ShapeDtypeStruct((Bp, Dp), x.dtype),
            grid=grid,
            in_specs=[act_in_spec, pl.BlockSpec((tb, Dp), lambda i: (i, 0))] + w_specs,
            out_specs=act_out_spec,
            compiler_params=cparams,
        )(xp, noise_p, we0, be0, wf, bf, wd1, bd1)

    return out_p[:B, :D], noise


# ----------------------------------------------------------------------------
# Parameter init (deterministic, in-script) matching nn.Linear shapes.
# PyTorch Linear(in, out) has weight (out, in), bias (out,). We store the
# weight pre-transposed to (in, out) and the bias as (1, out).
# ----------------------------------------------------------------------------
def init_unet_params(key, dims):
    enc_pairs = list(zip(dims[:-1], dims[1:]))
    rdims = tuple(reversed(dims))
    dec_pairs = list(zip(rdims[:-1], rdims[1:]))
    layers = []
    for (fan_in, fan_out) in enc_pairs + dec_pairs:
        key, kw, kb = jax.random.split(key, 3)
        bound = 1.0 / np.sqrt(fan_in)
        w = jax.random.uniform(kw, (fan_in, fan_out), jnp.float32, -bound, bound)
        b = jax.random.uniform(kb, (1, fan_out), jnp.float32, -bound, bound)
        layers.append((w, b))
    return tuple(layers), key


# Pure-JAX reference (un-fused, un-padded) for correctness checking.
def sunet_reference(x, block_params_list, noise):
    out = x * noise
    for pblock in block_params_list:
        (we0, be0), (we1, be1), (wd0, bd0), (wd1, bd1) = pblock
        xi = out
        h0 = jax.nn.relu(xi @ we0 + be0)
        z = h0 @ we1 + be1
        d0 = jax.nn.relu((z + z) @ wd0 + bd0)
        d1 = (d0 + h0) @ wd1 + bd1
        out = jax.nn.sigmoid(d1) + xi
    return out


if __name__ == "__main__":
    batch = 512                 # fills the MXU M dim; grid = (2,) with TB=256
    input_dim = 64
    hidden_params = (32, 16)    # dims (64, 32, 16): 2 encoder + 2 decoder Linear
    num_blocks = 2              # exercises multi-block fusion in one pallas_call

    key = jax.random.PRNGKey(0)
    key, kx = jax.random.split(key)
    x = jax.random.normal(kx, (batch, input_dim), jnp.float32)

    dims = (input_dim,) + hidden_params
    block_params_list = []
    for _ in range(num_blocks):
        pblock, key = init_unet_params(key, dims)
        block_params_list.append(pblock)

    # --- dropout == 0.0 path (noise-free specialized kernel) ---
    out, noise = sunet_forward(x, block_params_list, dropout=0.0)
    out = jax.block_until_ready(out)
    assert out.shape == x.shape and noise.shape == x.shape
    ref = sunet_reference(x, block_params_list, noise)
    np.testing.assert_allclose(np.asarray(out), np.asarray(ref), rtol=1e-4, atol=1e-5)

    # --- dropout > 0.0 path (noise-input kernel variant) ---
    key, kn = jax.random.split(key)
    out_d, noise_d = sunet_forward(x, block_params_list, dropout=0.5, noise_key=kn)
    out_d = jax.block_until_ready(out_d)
    ref_d = sunet_reference(x, block_params_list, noise_d)
    np.testing.assert_allclose(np.asarray(out_d), np.asarray(ref_d), rtol=1e-4, atol=1e-5)

    print("KERNEL_OK")
</pallas_src>

<mosaic_0001>
module attributes {stable_mosaic.version = 11 : i64} {
  func.func @sunet_kernel(%arg0: i32, %arg1: memref<256x128xf32, #tpu.memory_space<vmem>>, %arg2: memref<2x128x128xf32, #tpu.memory_space<vmem>>, %arg3: memref<2x1x128xf32, #tpu.memory_space<vmem>>, %arg4: memref<2x128x128xf32, #tpu.memory_space<vmem>>, %arg5: memref<2x1x128xf32, #tpu.memory_space<vmem>>, %arg6: memref<2x128x128xf32, #tpu.memory_space<vmem>>, %arg7: memref<2x1x128xf32, #tpu.memory_space<vmem>>, %arg8: memref<256x128xf32, #tpu.memory_space<vmem>>) attributes {dimension_semantics = [#tpu.dimension_semantics<parallel>], iteration_bounds = array<i64: 2>, scalar_prefetch = 0 : i64, scratch_operands = 0 : i64, tpu.core_type = #tpu.core_type<tc>, window_params = [{transform_indices = @transform_0, window_bounds = array<i64: 256, 128>}, {pipeline_mode = #tpu.pipeline_mode<synchronous>, transform_indices = @transform_1, window_bounds = array<i64: 2, 128, 128>}, {pipeline_mode = #tpu.pipeline_mode<synchronous>, transform_indices = @transform_2, window_bounds = array<i64: 2, 1, 128>}, {pipeline_mode = #tpu.pipeline_mode<synchronous>, transform_indices = @transform_3, window_bounds = array<i64: 2, 128, 128>}, {pipeline_mode = #tpu.pipeline_mode<synchronous>, transform_indices = @transform_4, window_bounds = array<i64: 2, 1, 128>}, {pipeline_mode = #tpu.pipeline_mode<synchronous>, transform_indices = @transform_5, window_bounds = array<i64: 2, 128, 128>}, {pipeline_mode = #tpu.pipeline_mode<synchronous>, transform_indices = @transform_6, window_bounds = array<i64: 2, 1, 128>}, {transform_indices = @transform_7, window_bounds = array<i64: 256, 128>}]} {
    %c0 = arith.constant 0 : index
    %c0_0 = arith.constant 0 : index
    %0 = vector.load %arg1[%c0, %c0_0] : memref<256x128xf32, #tpu.memory_space<vmem>>, vector<256x128xf32>
    %c0_1 = arith.constant 0 : index
    %c0_2 = arith.constant 0 : index
    %c0_3 = arith.constant 0 : index
    %1 = vector.load %arg2[%c0_1, %c0_2, %c0_3] : memref<2x128x128xf32, #tpu.memory_space<vmem>>, vector<1x128x128xf32>
    %2 = vector.shape_cast %1 : vector<1x128x128xf32> to vector<128x128xf32>
    %cst = arith.constant dense<0.000000e+00> : vector<256x128xf32>
    %3 = tpu.matmul %0, %2, %cst {dimension_numbers = #tpu.dot_dimension_numbers<[1], [0], [0], [1], [0, 0, 1, 1], [], []>} : vector<256x128xf32>, vector<128x128xf32>, vector<256x128xf32> -> vector<256x128xf32>
    %c0_4 = arith.constant 0 : index
    %c0_5 = arith.constant 0 : index
    %c0_6 = arith.constant 0 : index
    %4 = vector.load %arg3[%c0_4, %c0_5, %c0_6] : memref<2x1x128xf32, #tpu.memory_space<vmem>>, vector<1x1x128xf32>
    %5 = vector.shape_cast %4 : vector<1x1x128xf32> to vector<1x128xf32>
    %6 = vector.broadcast %5 : vector<1x128xf32> to vector<256x128xf32>
    %7 = arith.addf %3, %6 : vector<256x128xf32>
    %cst_7 = arith.constant 0.000000e+00 : f32
    %8 = vector.broadcast %cst_7 : f32 to vector<256x128xf32>
    %9 = arith.maximumf %7, %8 : vector<256x128xf32>
    %c0_8 = arith.constant 0 : index
    %c0_9 = arith.constant 0 : index
    %c0_10 = arith.constant 0 : index
    %10 = vector.load %arg4[%c0_8, %c0_9, %c0_10] : memref<2x128x128xf32, #tpu.memory_space<vmem>>, vector<1x128x128xf32>
    %11 = vector.shape_cast %10 : vector<1x128x128xf32> to vector<128x128xf32>
    %cst_11 = arith.constant dense<0.000000e+00> : vector<256x128xf32>
    %12 = tpu.matmul %9, %11, %cst_11 {dimension_numbers = #tpu.dot_dimension_numbers<[1], [0], [0], [1], [0, 0, 1, 1], [], []>} : vector<256x128xf32>, vector<128x128xf32>, vector<256x128xf32> -> vector<256x128xf32>
    %c0_12 = arith.constant 0 : index
    %c0_13 = arith.constant 0 : index
    %c0_14 = arith.constant 0 : index
    %13 = vector.load %arg5[%c0_12, %c0_13, %c0_14] : memref<2x1x128xf32, #tpu.memory_space<vmem>>, vector<1x1x128xf32>
    %14 = vector.shape_cast %13 : vector<1x1x128xf32> to vector<1x128xf32>
    %15 = vector.broadcast %14 : vector<1x128xf32> to vector<256x128xf32>
    %16 = arith.addf %12, %15 : vector<256x128xf32>
    %cst_15 = arith.constant 0.000000e+00 : f32
    %17 = vector.broadcast %cst_15 : f32 to vector<256x128xf32>
    %18 = arith.maximumf %16, %17 : vector<256x128xf32>
    %19 = arith.addf %18, %9 : vector<256x128xf32>
    %c0_16 = arith.constant 0 : index
    %c0_17 = arith.constant 0 : index
    %c0_18 = arith.constant 0 : index
    %20 = vector.load %arg6[%c0_16, %c0_17, %c0_18] : memref<2x128x128xf32, #tpu.memory_space<vmem>>, vector<1x128x128xf32>
    %21 = vector.shape_cast %20 : vector<1x128x128xf32> to vector<128x128xf32>
    %cst_19 = arith.constant dense<0.000000e+00> : vector<256x128xf32>
    %22 = tpu.matmul %19, %21, %cst_19 {dimension_numbers = #tpu.dot_dimension_numbers<[1], [0], [0], [1], [0, 0, 1, 1], [], []>} : vector<256x128xf32>, vector<128x128xf32>, vector<256x128xf32> -> vector<256x128xf32>
    %c0_20 = arith.constant 0 : index
    %c0_21 = arith.constant 0 : index
    %c0_22 = arith.constant 0 : index
    %23 = vector.load %arg7[%c0_20, %c0_21, %c0_22] : memref<2x1x128xf32, #tpu.memory_space<vmem>>, vector<1x1x128xf32>
    %24 = vector.shape_cast %23 : vector<1x1x128xf32> to vector<1x128xf32>
    %25 = vector.broadcast %24 : vector<1x128xf32> to vector<256x128xf32>
    %26 = arith.addf %22, %25 : vector<256x128xf32>
    %27 = arith.negf %26 : vector<256x128xf32>
    %28 = math.exp %27 : vector<256x128xf32>
    %cst_23 = arith.constant 1.000000e+00 : f32
    %29 = vector.broadcast %cst_23 : f32 to vector<256x128xf32>
    %30 = arith.addf %29, %28 : vector<256x128xf32>
    %31 = arith.divf %29, %30 : vector<256x128xf32>
    %32 = arith.addf %31, %0 : vector<256x128xf32>
    %c1 = arith.constant 1 : index
    %c0_24 = arith.constant 0 : index
    %c0_25 = arith.constant 0 : index
    %33 = vector.load %arg2[%c1, %c0_24, %c0_25] : memref<2x128x128xf32, #tpu.memory_space<vmem>>, vector<1x128x128xf32>
    %34 = vector.shape_cast %33 : vector<1x128x128xf32> to vector<128x128xf32>
    %cst_26 = arith.constant dense<0.000000e+00> : vector<256x128xf32>
    %35 = tpu.matmul %32, %34, %cst_26 {dimension_numbers = #tpu.dot_dimension_numbers<[1], [0], [0], [1], [0, 0, 1, 1], [], []>} : vector<256x128xf32>, vector<128x128xf32>, vector<256x128xf32> -> vector<256x128xf32>
    %c1_27 = arith.constant 1 : index
    %c0_28 = arith.constant 0 : index
    %c0_29 = arith.constant 0 : index
    %36 = vector.load %arg3[%c1_27, %c0_28, %c0_29] : memref<2x1x128xf32, #tpu.memory_space<vmem>>, vector<1x1x128xf32>
    %37 = vector.shape_cast %36 : vector<1x1x128xf32> to vector<1x128xf32>
    %38 = vector.broadcast %37 : vector<1x128xf32> to vector<256x128xf32>
    %39 = arith.addf %35, %38 : vector<256x128xf32>
    %cst_30 = arith.constant 0.000000e+00 : f32
    %40 = vector.broadcast %cst_30 : f32 to vector<256x128xf32>
    %41 = arith.maximumf %39, %40 : vector<256x128xf32>
    %c1_31 = arith.constant 1 : index
    %c0_32 = arith.constant 0 : index
    %c0_33 = arith.constant 0 : index
    %42 = vector.load %arg4[%c1_31, %c0_32, %c0_33] : memref<2x128x128xf32, #tpu.memory_space<vmem>>, vector<1x128x128xf32>
    %43 = vector.shape_cast %42 : vector<1x128x128xf32> to vector<128x128xf32>
    %cst_34 = arith.constant dense<0.000000e+00> : vector<256x128xf32>
    %44 = tpu.matmul %41, %43, %cst_34 {dimension_numbers = #tpu.dot_dimension_numbers<[1], [0], [0], [1], [0, 0, 1, 1], [], []>} : vector<256x128xf32>, vector<128x128xf32>, vector<256x128xf32> -> vector<256x128xf32>
    %c1_35 = arith.constant 1 : index
    %c0_36 = arith.constant 0 : index
    %c0_37 = arith.constant 0 : index
    %45 = vector.load %arg5[%c1_35, %c0_36, %c0_37] : memref<2x1x128xf32, #tpu.memory_space<vmem>>, vector<1x1x128xf32>
    %46 = vector.shape_cast %45 : vector<1x1x128xf32> to vector<1x128xf32>
    %47 = vector.broadcast %46 : vector<1x128xf32> to vector<256x128xf32>
    %48 = arith.addf %44, %47 : vector<256x128xf32>
    %cst_38 = arith.constant 0.000000e+00 : f32
    %49 = vector.broadcast %cst_38 : f32 to vector<256x128xf32>
    %50 = arith.maximumf %48, %49 : vector<256x128xf32>
    %51 = arith.addf %50, %41 : vector<256x128xf32>
    %c1_39 = arith.constant 1 : index
    %c0_40 = arith.constant 0 : index
    %c0_41 = arith.constant 0 : index
    %52 = vector.load %arg6[%c1_39, %c0_40, %c0_41] : memref<2x128x128xf32, #tpu.memory_space<vmem>>, vector<1x128x128xf32>
    %53 = vector.shape_cast %52 : vector<1x128x128xf32> to vector<128x128xf32>
    %cst_42 = arith.constant dense<0.000000e+00> : vector<256x128xf32>
    %54 = tpu.matmul %51, %53, %cst_42 {dimension_numbers = #tpu.dot_dimension_numbers<[1], [0], [0], [1], [0, 0, 1, 1], [], []>} : vector<256x128xf32>, vector<128x128xf32>, vector<256x128xf32> -> vector<256x128xf32>
    %c1_43 = arith.constant 1 : index
    %c0_44 = arith.constant 0 : index
    %c0_45 = arith.constant 0 : index
    %55 = vector.load %arg7[%c1_43, %c0_44, %c0_45] : memref<2x1x128xf32, #tpu.memory_space<vmem>>, vector<1x1x128xf32>
    %56 = vector.shape_cast %55 : vector<1x1x128xf32> to vector<1x128xf32>
    %57 = vector.broadcast %56 : vector<1x128xf32> to vector<256x128xf32>
    %58 = arith.addf %54, %57 : vector<256x128xf32>
    %59 = arith.negf %58 : vector<256x128xf32>
    %60 = math.exp %59 : vector<256x128xf32>
    %cst_46 = arith.constant 1.000000e+00 : f32
    %61 = vector.broadcast %cst_46 : f32 to vector<256x128xf32>
    %62 = arith.addf %61, %60 : vector<256x128xf32>
    %63 = arith.divf %61, %62 : vector<256x128xf32>
    %64 = arith.addf %63, %32 : vector<256x128xf32>
    %c0_47 = arith.constant 0 : index
    %c0_48 = arith.constant 0 : index
    %65 = vector.load %arg8[%c0_47, %c0_48] : memref<256x128xf32, #tpu.memory_space<vmem>>, vector<256x128xf32>
    tpu.vector_store %arg8[%c0_47, %c0_48], %64 {strides = array<i32>} : memref<256x128xf32, #tpu.memory_space<vmem>>, vector<256x128xf32>,
    return
  }
  func.func @transform_0(%arg0: i32) -> (i32, i32) {
    %c0_i32 = arith.constant 0 : i32
    %c0_i32_0 = arith.constant 0 : i32
    return %arg0, %c0_i32 : i32, i32
  }
  func.func @transform_1(%arg0: i32) -> (i32, i32, i32) {
    %c0_i32 = arith.constant 0 : i32
    %c0_i32_0 = arith.constant 0 : i32
    %c0_i32_1 = arith.constant 0 : i32
    %c0_i32_2 = arith.constant 0 : i32
    return %c0_i32, %c0_i32_0, %c0_i32_1 : i32, i32, i32
  }
  func.func @transform_2(%arg0: i32) -> (i32, i32, i32) {
    %c0_i32 = arith.constant 0 : i32
    %c0_i32_0 = arith.constant 0 : i32
    %c0_i32_1 = arith.constant 0 : i32
    %c0_i32_2 = arith.constant 0 : i32
    return %c0_i32, %c0_i32_0, %c0_i32_1 : i32, i32, i32
  }
  func.func @transform_3(%arg0: i32) -> (i32, i32, i32) {
    %c0_i32 = arith.constant 0 : i32
    %c0_i32_0 = arith.constant 0 : i32
    %c0_i32_1 = arith.constant 0 : i32
    %c0_i32_2 = arith.constant 0 : i32
    return %c0_i32, %c0_i32_0, %c0_i32_1 : i32, i32, i32
  }
  func.func @transform_4(%arg0: i32) -> (i32, i32, i32) {
    %c0_i32 = arith.constant 0 : i32
    %c0_i32_0 = arith.constant 0 : i32
    %c0_i32_1 = arith.constant 0 : i32
    %c0_i32_2 = arith.constant 0 : i32
    return %c0_i32, %c0_i32_0, %c0_i32_1 : i32, i32, i32
  }
  func.func @transform_5(%arg0: i32) -> (i32, i32, i32) {
    %c0_i32 = arith.constant 0 : i32
    %c0_i32_0 = arith.constant 0 : i32
    %c0_i32_1 = arith.constant 0 : i32
    %c0_i32_2 = arith.constant 0 : i32
    return %c0_i32, %c0_i32_0, %c0_i32_1 : i32, i32, i32
  }
  func.func @transform_6(%arg0: i32) -> (i32, i32, i32) {
    %c0_i32 = arith.constant 0 : i32
    %c0_i32_0 = arith.constant 0 : i32
    %c0_i32_1 = arith.constant 0 : i32
    %c0_i32_2 = arith.constant 0 : i32
    return %c0_i32, %c0_i32_0, %c0_i32_1 : i32, i32, i32
  }
  func.func @transform_7(%arg0: i32) -> (i32, i32) {
    %c0_i32 = arith.constant 0 : i32
    %c0_i32_0 = arith.constant 0 : i32
    return %arg0, %c0_i32 : i32, i32
  }
}

</mosaic_0001>

<bundles_post_ra>
// kernel: tpu_custom_call.1
= control target key start
LH: loop header
LB: loop body
LE: loop exit
PB: predicated region body
PF: predicated region fallthrough
CT: control target
= control target key end

     0   :  { %s5233_s0 = inlined_call_operand.hbm [shape: f32[512,128], index: 0, kind: input, shape index: {}]   ;;  %s5234_s1 = inlined_call_operand.hbm [shape: f32[2,128,128], index: 1, kind: input, shape index: {}]   ;;  %s5235_s2 = inlined_call_operand.vmem [shape: f32[2,1,128], index: 2, kind: input, shape index: {}]   ;;  %s5236_s3 = inlined_call_operand.hbm [shape: f32[2,128,128], index: 3, kind: input, shape index: {}]   ;;  %s5237_s4 = inlined_call_operand.vmem [shape: f32[2,1,128], index: 4, kind: input, shape index: {}]   ;;  %s5238_s5 = inlined_call_operand.hbm [shape: f32[2,128,128], index: 5, kind: input, shape index: {}]   ;;  %s5239_s6 = inlined_call_operand.vmem [shape: f32[2,1,128], index: 6, kind: input, shape index: {}]   ;;  %s5240_s7 = inlined_call_operand.hbm [shape: f32[512,128], index: 7, kind: output, shape index: {}]  }
   0x1   :  { %5313 = sst [smem:[#allocation33_spill]] %s5234_s1 }
   0x2   :  { %12 = vsyncpa [#allocation3], 0 }
   0x3   :  { %14 = vsyncpa [#allocation3 + $0x1], 0 }
   0x4   :  { %15 = vsyncpa [#allocation6], 0 }
   0x5   :  { %16 = vsyncpa [#allocation9], 0 }
   0x6   :  { %17 = vsyncpa [#allocation4], 0 }
   0x7   :  { %19 = vsyncpa [#allocation4 + $0x1], 0  ;;  %s4118_s24 = smov 0   ;;  %s4120_s25 = smov 0  }
   0x8   :  { %s4122_s26 = smov 0   ;;  %s4124_s27 = smov 0  }
   0x9 LB: > { %s4139_s28 = sadd.s32 4294967295, %s4067_s27   ;;  %s2657_s29 = sadd.s32 4294967294, %s4067_s27   ;;  %s4067_s27 = sphi %s4124_s27, %s5419_s27   ;;  %s4063_s26 = sphi %s4122_s26, %s5418_s26   ;;  %s4059_s25 = sphi %s4120_s25, %s5417_s25   ;;  %s4055_s24 = sphi %s4118_s24, %s5416_s24  }
   0xa   : > { %p45_p0 = scmp.ne.s32.totalorder %s4059_s25, %s4055_s24  ;;  %p5241_p1 = scmp.eq.s32.totalorder %s4139_s28, 0 }
   0xb   : > { %p195_p2 = scmp.eq.s32.totalorder %s4139_s28, 1  ;;  %p201_p3 = scmp.eq.s32.totalorder %s2657_s29, 1 }
   0xc   : > { %p4148_p4 = por %p5241_p1, %p45_p0  ;;  %p2658_p5 = scmp.ge.s32.totalorder %s4067_s27, 1 }
   0xd   : > { %p4153_p6 = por %p201_p3, %p45_p0  ;;  %p208_p7 = scmp.lt.s32.totalorder %s4067_s27, 3 }
   0xe   : > { %s5314_s30 = scalar_select %p4148_p4, 1, 0 }
   0xf   : > { %s5315_s8 = scalar_select %p4153_p6, 1, 0 }
  0x10   : > { %p4158_p8 = pnand %p2658_p5, %p208_p7  ;;  %s4069_s10 = smov [#allocation5]  }
  0x11   : > { %s220_s11 = sshll.u32 %s4069_s10, 4  ;;  %s4070_s13 = smov [#allocation7]   ;;  %s221_s11 = int_to_ptr.vmem [resolvable:$true] %s220_s11 }
  0x12   : > { %s5316_s9 = scalar_select %p4158_p8, 1, 0 }
  0x13   : > { %p3536_p9 = pneg %p4158_p8  ;;  %s236_s14 = sshll.u32 %s4070_s13, 4  ;;  %s237_s14 = int_to_ptr.vmem [resolvable:$true] %s236_s14 }
  0x14   : > { %s4071_s15 = smov [#allocation8]   ;;  %s3900_s17 = scalar_lea.vmem %s221_s11, 4096 }
  0x15   : > { %p4167_p11 = pnand %p3536_p9, %p5241_p1  ;;  %s252_s16 = sshll.u32 %s4071_s15, 4  ;;  %s253_s16 = int_to_ptr.vmem [resolvable:$true] %s252_s16 }
  0x16   : > { %p3901_p13 = scmp.ne.s32.totalorder %s221_s11, %s3900_s17  ;;  %p3908_p5 = scmp.lt.s32.totalorder %s221_s11, %s221_s11 }
  0x17   : > { %p3891_p12 = pneg %p4167_p11  ;;  %p3909_p7 = scmp.lt.s32.totalorder %s3900_s17, %s3900_s17 }
  0x19   : > { %p3903_p0 = pnand %p3901_p13, %p3891_p12  ;;  %p3910_p9 = por %p3909_p7, %p3908_p5 }
  0x1b   : > { %p3904_p3 = pneg %p3903_p0 }
  0x1d   : > { %p3911_p10 = pnand %p3910_p9, %p3904_p3 }
  0x1f   : > { %3914 = shalt.err (!%p3911_p10)
}
  0x20   : > { %s5242_s18 = smov 128   ;;  %s5243_s19 = smov 8  }
  0x21   : > { %s5318_s1 = sld [smem:[#allocation33_spill]]  ;;  %s3926_s22 = scalar_lea.vmem %s237_s14, 4096 }
  0x22   : > { %p3927_p13 = scmp.ne.s32.totalorder %s237_s14, %s3926_s22  ;;  %p3934_p3 = scmp.lt.s32.totalorder %s237_s14, %s237_s14 }
  0x23   : > { %p3935_p10 = scmp.lt.s32.totalorder %s3926_s22, %s3926_s22 }
  0x24   : > { %p3929_p0 = pnand %p3927_p13, %p3891_p12 }
  0x25   : > { %p3936_p7 = por %p3935_p10, %p3934_p3 }
  0x26   : > { %p3930_p5 = pneg %p3929_p0 }
  0x27   : > { %3539 = dma.hbm_to_vmem [thread:$0]  (!%p4167_p11), %s5318_s1, 4096, %s221_s11, [#allocation6], %s5242_s18, %s5242_s18, %s5243_s19  }
  0x28   : > { %p3937_p9 = pnand %p3936_p7, %p3930_p5 }
  0x2a   : > { %3940 = shalt.err (!%p3937_p9)
}
  0x2b   : > { %3542 = dma.hbm_to_vmem [thread:$0]  (!%p4167_p11), %s5236_s3, 4096, %s237_s14, [#allocation6], %s5242_s18, %s5242_s18, %s5243_s19  }
  0x2c   : > { %s3952_s10 = scalar_lea.vmem %s253_s16, 4096  ;;  %p3960_p3 = scmp.lt.s32.totalorder %s253_s16, %s253_s16 }
  0x2d   : > { %p3953_p1 = scmp.ne.s32.totalorder %s253_s16, %s3952_s10  ;;  %p3961_p5 = scmp.lt.s32.totalorder %s3952_s10, %s3952_s10 }
  0x2f   : > { %p3955_p13 = pnand %p3953_p1, %p3891_p12  ;;  %p3962_p10 = por %p3961_p5, %p3960_p3 }
  0x31   : > { %p3956_p0 = pneg %p3955_p13 }
  0x33   : > { %p3963_p7 = pnand %p3962_p10, %p3956_p0 }
  0x35   : > { %3966 = shalt.err (!%p3963_p7)
}
  0x36   : > { %3545 = dma.hbm_to_vmem [thread:$0]  (!%p4167_p11), %s5238_s5, 4096, %s253_s16, [#allocation9], %s5242_s18, %s5242_s18, %s5243_s19  }
  0x37   : > { %s4207_s14 = sadd.s32 1, %s4067_s27   ;;  %s32_s15 = sadd.s32 1, %s4063_s26 }
  0x38   : > { %s29_s12 = ssub.s32 %s4067_s27, %s4207_s14  ;;  %p39_p12 = scmp.ne.s32.totalorder %s4063_s26, %s4059_s25 }
  0x39   : > { %p30_p1 = scmp.eq.s32.totalorder %s29_s12, 0  ;;  %p40_p9 = scmp.eq.s32.totalorder %s4067_s27, 0 }
  0x3a   : > { %p3557_p13 = scmp.lt.s32.totalorder %s4067_s27, 2  ;;  %p4221_p3 = por %p195_p2, %p39_p12 }
  0x3b   : > { %s4217_s17 = scalar_select %p30_p1, %s4063_s26, %s32_s15  }
  0x3c   : > { %p41_p0 = por %p40_p9, %p39_p12  ;;  %s269_s21 = sand.u32 1, %s4063_s26  }
  0x3d   : > { %s5319_s20 = scalar_select %p4221_p3, 1, 0 }
  0x3e   : > { %s2750_s22 = sshll.u32 %s4067_s27, 12  ;;  %s2663_s16 = sshll.u32 %s269_s21, 8 }
  0x3f   : > { %s4230_s10 = scalar_lea.hbm %s5233_s0, %s2750_s22  ;;  %s273_s11 = scalar_lea.vmem [#allocation2], %s2663_s16 }
  0x40   : > { %s280_s13 = sshll.u32 %s273_s11, 4  ;;  %p4232_p11 = pnand %p3557_p13, %p41_p0  ;;  %s4236_s13 = int_to_ptr.vmem [resolvable:$true] %s280_s13 }
  0x41   : > { %s4238_s15 = scalar_lea.sflag [#allocation3], %s269_s21  ;;  %s3967_s18 = scalar_lea.hbm %s4230_s10, 4096 }
  0x42   : > { %p3968_p2 = scmp.ne.s32.totalorder %s4230_s10, %s3967_s18  ;;  %p3969_p5 = pneg %p4232_p11 }
  0x43   : > { %s3972_s16 = scalar_lea.hbm %s5233_s0, 8192  ;;  %p3973_p1 = scmp.lt.s32.totalorder %s4230_s10, %s5233_s0 }
  0x44   : > { %p3970_p10 = pnand %p3969_p5, %p3968_p2  ;;  %p3974_p12 = scmp.lt.s32.totalorder %s3972_s16, %s3967_s18 }
  0x46   : > { %p3971_p7 = pneg %p3970_p10  ;;  %p3975_p9 = por %p3974_p12, %p3973_p1 }
  0x48   : > { %p3976_p13 = pnand %p3975_p9, %p3971_p7 }
  0x4a   : > { %3979 = shalt.err (!%p3976_p13)
}
  0x4b   : > { %s3980_s21 = scalar_lea.vmem %s4236_s13, 4096  ;;  %s4074_s19 = smov [#allocation2]  }
  0x4c   : > { %p3981_p0 = scmp.ne.s32.totalorder %s4236_s13, %s3980_s21  ;;  %s3985_s1 = sshll.u32 %s4074_s19, 4  ;;  %s3986_s1 = int_to_ptr.vmem [resolvable:$false] %s3985_s1 }
  0x4d   : > { %s3987_s22 = scalar_lea.vmem %s3986_s1, 8192  ;;  %p3988_p10 = scmp.lt.s32.totalorder %s4236_s13, %s3986_s1 }
  0x4e   : > { %p3983_p6 = pnand %p3981_p0, %p3969_p5  ;;  %p3989_p3 = scmp.lt.s32.totalorder %s3987_s22, %s3980_s21 }
  0x50   : > { %p3984_p2 = pneg %p3983_p6  ;;  %p3990_p4 = por %p3989_p3, %p3988_p10 }
  0x52   : > { %p3991_p8 = pnand %p3990_p4, %p3984_p2 }
  0x54   : > { %3994 = shalt.err (!%p3991_p8)
}
  0x55   : > { %s5321_s18 = smov 8   ;;  %s5322_s23 = smov 128  }
  0x56   : > { %3549 = dma.hbm_to_vmem [thread:$0]  (!%p4232_p11), %s4230_s10, 4096, %s4236_s13, %s4238_s15, %s5322_s23, %s5322_s23, %s5321_s18  }
  0x57   : > { %p5323_p6 = scmp.ne.s32.totalorder %s5316_s9, 0 }
  0x59   : > { %292 = sbr.rel (%p5323_p6) target bundleno = 1480 (0x5c8), region = 48 }
  0x5e   : > { %s4265_s19 = sand.u32 1, %s4059_s25   ;;  %p5324_p4 = scmp.ne.s32.totalorder %s5314_s30, 0 }
  0x5f   : > { %s2667_s1 = sshll.u32 %s4265_s19, 8  ;;  %s295_s16 = scalar_lea.sflag [#allocation3], %s4265_s19 }
  0x60   : > { %s4271_s12 = scalar_lea.vmem [#allocation2], %s2667_s1 }
  0x61   : > { %4038 = dma.done.wait (%p5324_p4), %s295_s16, 4096  }
  0x62   : > { %4040 = vsyncadd (%p5324_p4), %s295_s16, 4294963200  ;;  %p5325_p8 = scmp.eq.s32.totalorder %s4139_s28, 0 }
  0x64   : > { %4042 = dma.done.wait (%p5325_p8), [#allocation6], 8192   ;;  %p5326_p3 = pmov %p5325_p8 }
  0x66   : > { %4044 = vsyncadd (%p5326_p3), [#allocation6], 4294959104  ;;  %p5327_p11 = pmov %p5326_p3 }
  0x67   : > { %p5328_p5 = pmov %p5326_p3 }
  0x68   : > { %4046 = dma.done.wait (%p5327_p11), [#allocation9], 4096  }
  0x69   : > { %4048 = vsyncadd (%p5328_p5), [#allocation9], 4294963200  ;;  %v390_v0 = vld [vmem:[#allocation5 + $0x78] sm:$0xff]  ;;  %v389_v1 = vld [vmem:[#allocation5 + $0x70] sm:$0xff]  ;;  %p5413_p1 = scmp.ne.s32.totalorder %s5319_s20, 0  ;;  %s4075_s29 = smov [#allocation10]  }
  0x6a   : > { %3040 = vmatprep.subr.mxu0 %v390_v0  ;;  %v388_v2 = vld [vmem:[#allocation5 + $0x68] sm:$0xff]  ;;  %v387_v3 = vld [vmem:[#allocation5 + $0x60] sm:$0xff]  ;;  %v386_v5 = vld [vmem:[#allocation5 + $0x58] sm:$0xff]  ;;  %s3999_s11 = sshll.u32 %s4075_s29, 4  ;;  %s4000_s11 = int_to_ptr.vmem [resolvable:$false] %s3999_s11 }
  0x6b   : > { %3041 = vmatpush3.msra.mxu0 %v390_v0  ;;  %v343_v4 = vld [vmem:[%s4271_s12] sm:$0xff]  ;;  %v385_v6 = vld [vmem:[#allocation5 + $0x50] sm:$0xff]  ;;  %v384_v7 = vld [vmem:[#allocation5 + $0x48] sm:$0xff]  ;;  %s4001_s21 = scalar_lea.vmem %s4000_s11, 8192 }
  0x6c   : > { %3042 = vmatprep.subr.mxu0 %v389_v1  ;;  %3072 = vmatprep.mubr.f32.mxu0 %v343_v4  ;;  %v383_v8 = vld [vmem:[#allocation5 + $0x40] sm:$0xff]  ;;  %v382_v9 = vld [vmem:[#allocation5 + $0x38] sm:$0xff]  ;;  %v381_v10 = vld [vmem:[#allocation5 + $0x30] sm:$0xff] }
  0x6d   : > { %3043 = vmatpush3.msra.mxu0 %v389_v1  ;;  %v670_v11 = vld [vmem:[#allocation7 + $0x78] sm:$0xff]  ;;  %v669_v12 = vld [vmem:[#allocation7 + $0x70] sm:$0xff]  ;;  %v380_v13 = vld [vmem:[#allocation5 + $0x28] sm:$0xff] }
  0x6e   : > { %3044 = vmatprep.subr.mxu0 %v388_v2  ;;  %3120 = vmatprep.subr.mxu1 %v670_v11  ;;  %v668_v14 = vld [vmem:[#allocation7 + $0x68] sm:$0xff]  ;;  %v379_v15 = vld [vmem:[#allocation5 + $0x20] sm:$0xff]  ;;  %v378_v17 = vld [vmem:[#allocation5 + $0x18] sm:$0xff] }
  0x6f   : > { %3045 = vmatpush3.msra.mxu0 %v388_v2  ;;  %3121 = vmatpush3.msra.mxu1 %v670_v11  ;;  %v667_v16 = vld [vmem:[#allocation7 + $0x60] sm:$0xff]  ;;  %v666_v18 = vld [vmem:[#allocation7 + $0x58] sm:$0xff]  ;;  %v377_v19 = vld [vmem:[#allocation5 + $0x10] sm:$0xff] }
  0x70   : > { %3046 = vmatprep.subr.mxu0 %v387_v3  ;;  %3122 = vmatprep.subr.mxu1 %v669_v12  ;;  %v665_v20 = vld [vmem:[#allocation7 + $0x50] sm:$0xff]  ;;  %v376_v21 = vld [vmem:[#allocation5 + $0x8] sm:$0xff]  ;;  %v375_v23 = vld [vmem:[#allocation5] sm:$0xff] }
  0x71   : > { %3047 = vmatpush3.msra.mxu0 %v387_v3  ;;  %3123 = vmatpush3.msra.mxu1 %v669_v12  ;;  %v664_v22 = vld [vmem:[#allocation7 + $0x48] sm:$0xff]  ;;  %v663_v24 = vld [vmem:[#allocation7 + $0x40] sm:$0xff]  ;;  %v662_v26 = vld [vmem:[#allocation7 + $0x38] sm:$0xff] }
  0x72   : > { %3048 = vmatprep.subr.mxu0 %v386_v5  ;;  %3124 = vmatprep.subr.mxu1 %v668_v14  ;;  %v344_v25 = vld [vmem:[%s4271_s12 + $0x8] sm:$0xff]  ;;  %v345_v27 = vld [vmem:[%s4271_s12 + $0x10] sm:$0xff]  ;;  %v346_v29 = vld [vmem:[%s4271_s12 + $0x18] sm:$0xff] }
  0x73   : > { %3049 = vmatpush3.msra.mxu0 %v386_v5  ;;  %3125 = vmatpush3.msra.mxu1 %v668_v14  ;;  %v661_v28 = vld [vmem:[#allocation7 + $0x30] sm:$0xff]  ;;  %v660_v30 = vld [vmem:[#allocation7 + $0x28] sm:$0xff]  ;;  %v347_v31 = vld [vmem:[%s4271_s12 + $0x20] sm:$0xff] }
  0x74   : > { %3050 = vmatprep.subr.mxu0 %v385_v6  ;;  %3126 = vmatprep.subr.mxu1 %v667_v16  ;;  %v659_v32 = vld [vmem:[#allocation7 + $0x20] sm:$0xff]  ;;  %v348_v33 = vld [vmem:[%s4271_s12 + $0x28] sm:$0xff]  ;;  %v349_v34 = vld [vmem:[%s4271_s12 + $0x30] sm:$0xff] }
  0x75   : > { %3051 = vmatpush3.msra.mxu0 %v385_v6  ;;  %3127 = vmatpush3.msra.mxu1 %v667_v16  ;;  %v350_v35 = vld [vmem:[%s4271_s12 + $0x38] sm:$0xff]  ;;  %v351_v36 = vld [vmem:[%s4271_s12 + $0x40] sm:$0xff]  ;;  %v352_v37 = vld [vmem:[%s4271_s12 + $0x48] sm:$0xff] }
  0x76   : > { %3052 = vmatprep.subr.mxu0 %v384_v7  ;;  %3128 = vmatprep.subr.mxu1 %v666_v18  ;;  %v353_v38 = vld [vmem:[%s4271_s12 + $0x50] sm:$0xff]  ;;  %v354_v39 = vld [vmem:[%s4271_s12 + $0x58] sm:$0xff]  ;;  %v355_v40 = vld [vmem:[%s4271_s12 + $0x60] sm:$0xff] }
  0x77   : > { %3053 = vmatpush3.msra.mxu0 %v384_v7  ;;  %3129 = vmatpush3.msra.mxu1 %v666_v18  ;;  %v356_v41 = vld [vmem:[%s4271_s12 + $0x68] sm:$0xff]  ;;  %v357_v42 = vld [vmem:[%s4271_s12 + $0x70] sm:$0xff]  ;;  %v358_v43 = vld [vmem:[%s4271_s12 + $0x78] sm:$0xff] }
  0x78   : > { %3054 = vmatprep.subr.mxu0 %v383_v8  ;;  %3130 = vmatprep.subr.mxu1 %v665_v20  ;;  %v359_v44 = vld [vmem:[%s4271_s12 + $0x80] sm:$0xff]  ;;  %v360_v45 = vld [vmem:[%s4271_s12 + $0x88] sm:$0xff]  ;;  %v361_v46 = vld [vmem:[%s4271_s12 + $0x90] sm:$0xff] }
  0x79   : > { %3055 = vmatpush3.msra.mxu0 %v383_v8  ;;  %3131 = vmatpush3.msra.mxu1 %v665_v20  ;;  %v362_v47 = vld [vmem:[%s4271_s12 + $0x98] sm:$0xff]  ;;  %v363_v48 = vld [vmem:[%s4271_s12 + $0xa0] sm:$0xff]  ;;  %v364_v49 = vld [vmem:[%s4271_s12 + $0xa8] sm:$0xff] }
  0x7a   : > { %3056 = vmatprep.subr.mxu0 %v382_v9  ;;  %3132 = vmatprep.subr.mxu1 %v664_v22  ;;  %v365_v50 = vld [vmem:[%s4271_s12 + $0xb0] sm:$0xff]  ;;  %v366_v51 = vld [vmem:[%s4271_s12 + $0xb8] sm:$0xff]  ;;  %v367_v52 = vld [vmem:[%s4271_s12 + $0xc0] sm:$0xff] }
  0x7b   : > { %3057 = vmatpush3.msra.mxu0 %v382_v9  ;;  %3133 = vmatpush3.msra.mxu1 %v664_v22  ;;  %v368_v53 = vld [vmem:[%s4271_s12 + $0xc8] sm:$0xff]  ;;  %v369_v54 = vld [vmem:[%s4271_s12 + $0xd0] sm:$0xff]  ;;  %v370_v55 = vld [vmem:[%s4271_s12 + $0xd8] sm:$0xff] }
  0x7c   : > { %3058 = vmatprep.subr.mxu0 %v381_v10  ;;  %3134 = vmatprep.subr.mxu1 %v663_v24  ;;  %v371_v56 = vld [vmem:[%s4271_s12 + $0xe0] sm:$0xff]  ;;  %v372_v57 = vld [vmem:[%s4271_s12 + $0xe8] sm:$0xff]  ;;  %v373_v58 = vld [vmem:[%s4271_s12 + $0xf0] sm:$0xff] }
  0x7d   : > { %3059 = vmatpush3.msra.mxu0 %v381_v10  ;;  %3135 = vmatpush3.msra.mxu1 %v663_v24  ;;  %v374_v59 = vld [vmem:[%s4271_s12 + $0xf8] sm:$0xff]  ;;  %v657_v61 = vld [vmem:[#allocation7 + $0x10] sm:$0xff]  ;;  %v656_v62 = vld [vmem:[#allocation7 + $0x8] sm:$0xff] }
  0x7e   : > { %3060 = vmatprep.subr.mxu0 %v380_v13  ;;  %3136 = vmatprep.subr.mxu1 %v662_v26  ;;  %v658_v60 = vld [vmem:[#allocation7 + $0x18] sm:$0xff]  ;;  %v655_v63 = vld [vmem:[#allocation7] sm:$0xff]  ;;  %v981_v1 = vld [vmem:[#allocation8 + $0x70] sm:$0xff] }
  0x7f   : > { %3061 = vmatpush3.msra.mxu0 %v380_v13  ;;  %3137 = vmatpush3.msra.mxu1 %v662_v26  ;;  %v982_v0 = vld [vmem:[#allocation8 + $0x78] sm:$0xff]  ;;  %v980_v2 = vld [vmem:[#allocation8 + $0x68] sm:$0xff]  ;;  %v979_v3 = vld [vmem:[#allocation8 + $0x60] sm:$0xff] }
  0x80   : > { %3062 = vmatprep.subr.mxu0 %v379_v15  ;;  %3138 = vmatprep.subr.mxu1 %v661_v28  ;;  %v978_v4 = vld [vmem:[#allocation8 + $0x58] sm:$0xff]  ;;  %v977_v5 = vld [vmem:[#allocation8 + $0x50] sm:$0xff]  ;;  %v976_v6 = vld [vmem:[#allocation8 + $0x48] sm:$0xff] }
  0x81   : > { %3063 = vmatpush3.msra.mxu0 %v379_v15  ;;  %3139 = vmatpush3.msra.mxu1 %v661_v28  ;;  %v975_v7 = vld [vmem:[#allocation8 + $0x40] sm:$0xff]  ;;  %v974_v8 = vld [vmem:[#allocation8 + $0x38] sm:$0xff]  ;;  %v973_v9 = vld [vmem:[#allocation8 + $0x30] sm:$0xff] }
  0x82   : > { %3064 = vmatprep.subr.mxu0 %v378_v17  ;;  %3140 = vmatprep.subr.mxu1 %v660_v30  ;;  %v972_v10 = vld [vmem:[#allocation8 + $0x28] sm:$0xff]  ;;  %v971_v11 = vld [vmem:[#allocation8 + $0x20] sm:$0xff]  ;;  %v970_v12 = vld [vmem:[#allocation8 + $0x18] sm:$0xff] }
  0x83   : > { %3065 = vmatpush3.msra.mxu0 %v378_v17  ;;  %3141 = vmatpush3.msra.mxu1 %v660_v30  ;;  %v969_v13 = vld [vmem:[#allocation8 + $0x10] sm:$0xff]  ;;  %v4320_v14 = vld [vmem:[%s5235_s2] ss:$0 sm:$0xff] }
  0x84   : > { %3066 = vmatprep.subr.mxu0 %v377_v19  ;;  %3142 = vmatprep.subr.mxu1 %v659_v32 }
  0x85   : > { %3067 = vmatpush3.msra.mxu0 %v377_v19  ;;  %3143 = vmatpush3.msra.mxu1 %v659_v32 }
  0x86   : > { %3068 = vmatprep.subr.mxu0 %v376_v21  ;;  %3144 = vmatprep.subr.mxu1 %v658_v60 }
  0x87   : > { %3069 = vmatpush3.msra.mxu0 %v376_v21  ;;  %3145 = vmatpush3.msra.mxu1 %v658_v60 }
  0x88   : > { %3070 = vmatprep.subr.mxu0 %v375_v23  ;;  %3146 = vmatprep.subr.mxu1 %v657_v61 }
  0x89   : > { %3071 = vmatpush3.msra.mxu0 %v375_v23  ;;  %3147 = vmatpush3.msra.mxu1 %v657_v61 }
  0x8a   : > { %3073 = vmatmul.mubr.f32.vlgmr.msra.gmra.mxu0 %v344_v25  ;;  %3148 = vmatprep.subr.mxu1 %v656_v62 }
  0x8b   : > { %3075 = vmatprep.mubr.f32.mxu0 %v345_v27  ;;  %3149 = vmatpush3.msra.mxu1 %v656_v62 }
  0x8c   : > { %3150 = vmatprep.subr.mxu1 %v655_v63  ;;  %3200 = vmatprep.subr.mxu0 %v982_v0 }
  0x8d   : > { %3151 = vmatpush3.msra.mxu1 %v655_v63  ;;  %3201 = vmatpush3.msra.mxu0 %v982_v0 }
  0x8e   : > { %3076 = vmatmul.mubr.f32.gmra.mxu0 %v346_v29  ;;  %3202 = vmatprep.subr.mxu0 %v981_v1 }
  0x8f   : > { %3078 = vmatprep.mubr.f32.mxu0 %v347_v31  ;;  %3203 = vmatpush3.msra.mxu0 %v981_v1 }
  0x90   : > { %3204 = vmatprep.subr.mxu0 %v980_v2 }
  0x91   : > { %3205 = vmatpush3.msra.mxu0 %v980_v2 }
  0x92   : > { %3079 = vmatmul.mubr.f32.gmra.mxu0 %v348_v33  ;;  %3206 = vmatprep.subr.mxu0 %v979_v3 }
  0x93   : > { %3081 = vmatprep.mubr.f32.mxu0 %v349_v34  ;;  %3207 = vmatpush3.msra.mxu0 %v979_v3 }
  0x94   : > { %3208 = vmatprep.subr.mxu0 %v978_v4 }
  0x95   : > { %3209 = vmatpush3.msra.mxu0 %v978_v4 }
  0x96   : > { %3082 = vmatmul.mubr.f32.gmra.mxu0 %v350_v35  ;;  %3210 = vmatprep.subr.mxu0 %v977_v5 }
  0x97   : > { %3084 = vmatprep.mubr.f32.mxu0 %v351_v36  ;;  %3211 = vmatpush3.msra.mxu0 %v977_v5 }
  0x98   : > { %3212 = vmatprep.subr.mxu0 %v976_v6 }
  0x99   : > { %3213 = vmatpush3.msra.mxu0 %v976_v6 }
  0x9a   : > { %3085 = vmatmul.mubr.f32.gmra.mxu0 %v352_v37  ;;  %3214 = vmatprep.subr.mxu0 %v975_v7 }
  0x9b   : > { %3087 = vmatprep.mubr.f32.mxu0 %v353_v38  ;;  %3215 = vmatpush3.msra.mxu0 %v975_v7 }
  0x9c   : > { %3216 = vmatprep.subr.mxu0 %v974_v8 }
  0x9d   : > { %3217 = vmatpush3.msra.mxu0 %v974_v8 }
  0x9e   : > { %3088 = vmatmul.mubr.f32.gmra.mxu0 %v354_v39  ;;  %3218 = vmatprep.subr.mxu0 %v973_v9 }
  0x9f   : > { %3090 = vmatprep.mubr.f32.mxu0 %v355_v40  ;;  %3219 = vmatpush3.msra.mxu0 %v973_v9 }
  0xa0   : > { %3220 = vmatprep.subr.mxu0 %v972_v10 }
  0xa1   : > { %3221 = vmatpush3.msra.mxu0 %v972_v10 }
  0xa2   : > { %3091 = vmatmul.mubr.f32.gmra.mxu0 %v356_v41  ;;  %3222 = vmatprep.subr.mxu0 %v971_v11 }
  0xa3   : > { %3093 = vmatprep.mubr.f32.mxu0 %v357_v42  ;;  %3223 = vmatpush3.msra.mxu0 %v971_v11 }
  0xa4   : > { %3224 = vmatprep.subr.mxu0 %v970_v12 }
  0xa5   : > { %3225 = vmatpush3.msra.mxu0 %v970_v12 }
  0xa6   : > { %3094 = vmatmul.mubr.f32.gmra.mxu0 %v358_v43  ;;  %3226 = vmatprep.subr.mxu0 %v969_v13 }
  0xa7   : > { %3096 = vmatprep.mubr.f32.mxu0 %v359_v44  ;;  %3227 = vmatpush3.msra.mxu0 %v969_v13 }
  0xaa   : > { %3097 = vmatmul.mubr.f32.gmra.mxu0 %v360_v45 }
  0xab   : > { %3099 = vmatprep.mubr.f32.mxu0 %v361_v46 }
  0xae   : > { %3100 = vmatmul.mubr.f32.gmra.mxu0 %v362_v47 }
  0xaf   : > { %3102 = vmatprep.mubr.f32.mxu0 %v363_v48 }
  0xb2   : > { %3103 = vmatmul.mubr.f32.gmra.mxu0 %v364_v49 }
  0xb3   : > { %3105 = vmatprep.mubr.f32.mxu0 %v365_v50 }
  0xb6   : > { %3106 = vmatmul.mubr.f32.gmra.mxu0 %v366_v51 }
  0xb7   : > { %3108 = vmatprep.mubr.f32.mxu0 %v367_v52 }
  0xba   : > { %3109 = vmatmul.mubr.f32.gmra.mxu0 %v368_v53 }
  0xbb   : > { %3111 = vmatprep.mubr.f32.mxu0 %v369_v54 }
  0xbe   : > { %3112 = vmatmul.mubr.f32.gmra.mxu0 %v370_v55 }
  0xbf   : > { %3114 = vmatprep.mubr.f32.mxu0 %v371_v56 }
  0xc2   : > { %3115 = vmatmul.mubr.f32.gmra.mxu0 %v372_v57 }
  0xc3   : > { %3117 = vmatprep.mubr.f32.mxu0 %v373_v58 }
  0xc6   : > { %3118 = vmatmul.mubr.f32.gmra.mxu0 %v374_v59 }
 0x14a   : > { %v3074_v15 = vpop.f32.mrf.mxu0 }
 0x14b   : > { %v4323_v16 = vadd.f32 %v3074_v15, %v4320_v14 }
 0x14c   : > { %v464_v17 = vpop.f32.mrf.mxu0 }
 0x14d   : > { %v4326_v18 = vadd.f32 %v4320_v14, %v464_v17  ;;  %v624_v21 = vmax.f32 %v4323_v16, 0.0 }
 0x14e   : > { %v3077_v19 = vpop.f32.mrf.mxu0 }
 0x14f   : > { %v623_v20 = vmax.f32 %v4326_v18, 0.0  ;;  %v4331_v22 = vadd.f32 %v3077_v19, %v4320_v14 }
 0x150   : > { %v474_v23 = vpop.f32.mrf.mxu0 }
 0x151   : > { %v4334_v24 = vadd.f32 %v4320_v14, %v474_v23  ;;  %3152 = vmatprep.mubr.f32.mxu1 %v623_v20  ;;  %v626_v27 = vmax.f32 %v4331_v22, 0.0 }
 0x152   : > { %v3080_v25 = vpop.f32.mrf.mxu0  ;;  %3153 = vmatmul.mubr.f32.vlgmr.msra.gmra.mxu1 %v624_v21 }
 0x153   : > { %v625_v26 = vmax.f32 %v4334_v24, 0.0  ;;  %v4343_v28 = vadd.f32 %v3080_v25, %v4320_v14 }
 0x154   : > { %v484_v29 = vpop.f32.mrf.mxu0 }
 0x155   : > { %v4346_v30 = vadd.f32 %v4320_v14, %v484_v29  ;;  %3155 = vmatprep.mubr.f32.mxu1 %v625_v26  ;;  %v628_v33 = vmax.f32 %v4343_v28, 0.0 }
 0x156   : > { %v3083_v31 = vpop.f32.mrf.mxu0  ;;  %3156 = vmatmul.mubr.f32.gmra.mxu1 %v626_v27 }
 0x157   : > { %v627_v32 = vmax.f32 %v4346_v30, 0.0  ;;  %v4355_v34 = vadd.f32 %v3083_v31, %v4320_v14 }
 0x158   : > { %v494_v35 = vpop.f32.mrf.mxu0 }
 0x159   : > { %v4358_v36 = vadd.f32 %v4320_v14, %v494_v35  ;;  %3158 = vmatprep.mubr.f32.mxu1 %v627_v32  ;;  %v630_v39 = vmax.f32 %v4355_v34, 0.0 }
 0x15a   : > { %v3086_v37 = vpop.f32.mrf.mxu0  ;;  %3159 = vmatmul.mubr.f32.gmra.mxu1 %v628_v33 }
 0x15b   : > { %v629_v38 = vmax.f32 %v4358_v36, 0.0  ;;  %v4367_v40 = vadd.f32 %v3086_v37, %v4320_v14 }
 0x15c   : > { %v504_v41 = vpop.f32.mrf.mxu0 }
 0x15d   : > { %v4370_v42 = vadd.f32 %v4320_v14, %v504_v41  ;;  %3161 = vmatprep.mubr.f32.mxu1 %v629_v38  ;;  %v632_v45 = vmax.f32 %v4367_v40, 0.0 }
 0x15e   : > { %v3089_v43 = vpop.f32.mrf.mxu0  ;;  %3162 = vmatmul.mubr.f32.gmra.mxu1 %v630_v39 }
 0x15f   : > { %v631_v44 = vmax.f32 %v4370_v42, 0.0  ;;  %v4379_v46 = vadd.f32 %v3089_v43, %v4320_v14 }
 0x160   : > { %v514_v47 = vpop.f32.mrf.mxu0 }
 0x161   : > { %v4382_v48 = vadd.f32 %v4320_v14, %v514_v47  ;;  %3164 = vmatprep.mubr.f32.mxu1 %v631_v44  ;;  %v634_v51 = vmax.f32 %v4379_v46, 0.0 }
 0x162   : > { %v3092_v49 = vpop.f32.mrf.mxu0  ;;  %3165 = vmatmul.mubr.f32.gmra.mxu1 %v632_v45 }
 0x163   : > { %v633_v50 = vmax.f32 %v4382_v48, 0.0  ;;  %v4391_v52 = vadd.f32 %v3092_v49, %v4320_v14 }
 0x164   : > { %v524_v53 = vpop.f32.mrf.mxu0 }
 0x165   : > { %v4394_v54 = vadd.f32 %v4320_v14, %v524_v53  ;;  %3167 = vmatprep.mubr.f32.mxu1 %v633_v50  ;;  %v636_v57 = vmax.f32 %v4391_v52, 0.0 }
 0x166   : > { %v3095_v55 = vpop.f32.mrf.mxu0  ;;  %3168 = vmatmul.mubr.f32.gmra.mxu1 %v634_v51 }
 0x167   : > { %v635_v56 = vmax.f32 %v4394_v54, 0.0  ;;  %v4403_v58 = vadd.f32 %v3095_v55, %v4320_v14 }
 0x168   : > { %v534_v59 = vpop.f32.mrf.mxu0 }
 0x169   : > { %v4406_v60 = vadd.f32 %v4320_v14, %v534_v59  ;;  %3170 = vmatprep.mubr.f32.mxu1 %v635_v56  ;;  %v638_v63 = vmax.f32 %v4403_v58, 0.0 }
 0x16a   : > { %v3098_v61 = vpop.f32.mrf.mxu0  ;;  %3171 = vmatmul.mubr.f32.gmra.mxu1 %v636_v57 }
 0x16b   : > { %v637_v62 = vmax.f32 %v4406_v60, 0.0  ;;  %v4415_v0 = vadd.f32 %v3098_v61, %v4320_v14 }
 0x16c   : > { %v544_v1 = vpop.f32.mrf.mxu0 }
 0x16d   : > { %v4418_v2 = vadd.f32 %v4320_v14, %v544_v1  ;;  %3173 = vmatprep.mubr.f32.mxu1 %v637_v62  ;;  %v5261_v5 = vmax.f32 %v4415_v0, 0.0  ;;  %v5330_v60 = vmax.f32 %v4415_v0, 0.0 }
 0x16e   : > { %v3101_v3 = vpop.f32.mrf.mxu0  ;;  %3174 = vmatmul.mubr.f32.gmra.mxu1 %v638_v63 }
 0x16f   : > { %v5262_v4 = vmax.f32 %v4418_v2, 0.0  ;;  %v4427_v6 = vadd.f32 %v3101_v3, %v4320_v14 }
 0x170   : > { %v554_v7 = vpop.f32.mrf.mxu0 }
 0x171   : > { %v4430_v8 = vadd.f32 %v4320_v14, %v554_v7  ;;  %3176 = vmatprep.mubr.f32.mxu1 %v5262_v4  ;;  %v5259_v11 = vmax.f32 %v4427_v6, 0.0 }
 0x172   : > { %v3104_v9 = vpop.f32.mrf.mxu0  ;;  %3177 = vmatmul.mubr.f32.gmra.mxu1 %v5261_v5 }
 0x173   : > { %v5260_v10 = vmax.f32 %v4430_v8, 0.0  ;;  %v4439_v12 = vadd.f32 %v3104_v9, %v4320_v14 }
 0x174   : > { %v564_v13 = vpop.f32.mrf.mxu0 }
 0x175   : > { %v4442_v15 = vadd.f32 %v4320_v14, %v564_v13  ;;  %3179 = vmatprep.mubr.f32.mxu1 %v5260_v10  ;;  %v5257_v23 = vmax.f32 %v4439_v12, 0.0 }
 0x176   : > { %v3107_v17 = vpop.f32.mrf.mxu0  ;;  %3180 = vmatmul.mubr.f32.gmra.mxu1 %v5259_v11 }
 0x177   : > { %v5258_v19 = vmax.f32 %v4442_v15, 0.0  ;;  %v4451_v25 = vadd.f32 %v3107_v17, %v4320_v14 }
 0x178   : > { %v574_v29 = vpop.f32.mrf.mxu0 }
 0x179   : > { %v4454_v31 = vadd.f32 %v4320_v14, %v574_v29  ;;  %3182 = vmatprep.mubr.f32.mxu1 %v5258_v19  ;;  %v5255_v41 = vmax.f32 %v4451_v25, 0.0 }
 0x17a   : > { %v3110_v35 = vpop.f32.mrf.mxu0  ;;  %3183 = vmatmul.mubr.f32.gmra.mxu1 %v5257_v23 }
 0x17b   : > { %v5256_v37 = vmax.f32 %v4454_v31, 0.0  ;;  %v4463_v43 = vadd.f32 %v3110_v35, %v4320_v14 }
 0x17c   : > { %v584_v47 = vpop.f32.mrf.mxu0 }
 0x17d   : > { %v4466_v49 = vadd.f32 %v4320_v14, %v584_v47  ;;  %3185 = vmatprep.mubr.f32.mxu1 %v5256_v37  ;;  %v5247_v59 = vmax.f32 %v4463_v43, 0.0 }
 0x17e   : > { %v3113_v53 = vpop.f32.mrf.mxu0  ;;  %3186 = vmatmul.mubr.f32.gmra.mxu1 %v5255_v41 }
 0x17f   : > { %v5248_v55 = vmax.f32 %v4466_v49, 0.0  ;;  %v4475_v61 = vadd.f32 %v3113_v53, %v4320_v14 }
 0x180   : > { %v594_v1 = vpop.f32.mrf.mxu0 }
 0x181   : > { %v4478_v3 = vadd.f32 %v4320_v14, %v594_v1  ;;  %3188 = vmatprep.mubr.f32.mxu1 %v5248_v55  ;;  %v5249_v13 = vmax.f32 %v4475_v61, 0.0 }
 0x182   : > { %v3116_v7 = vpop.f32.mrf.mxu0  ;;  %3189 = vmatmul.mubr.f32.gmra.mxu1 %v5247_v59 }
 0x183   : > { %v5252_v9 = vmax.f32 %v4478_v3, 0.0  ;;  %v4487_v17 = vadd.f32 %v3116_v7, %v4320_v14 }
 0x184   : > { %v604_v29 = vpop.f32.mrf.mxu0 }
 0x185   : > { %v4490_v35 = vadd.f32 %v4320_v14, %v604_v29  ;;  %3191 = vmatprep.mubr.f32.mxu1 %v5252_v9  ;;  %v5251_v1 = vmax.f32 %v4487_v17, 0.0  ;;  %v1452_v9 = vld [vmem:[#allocation5 + $0xe0] sm:$0xff] }
 0x186   : > { %v3119_v47 = vpop.f32.mrf.mxu0  ;;  %3192 = vmatmul.mubr.f32.gmra.mxu1 %v5249_v13 }
 0x187   : > { %v5250_v53 = vmax.f32 %v4490_v35, 0.0  ;;  %v4499_v59 = vadd.f32 %v3119_v47, %v4320_v14  ;;  %v968_v47 = vld [vmem:[#allocation8 + $0x8] sm:$0xff] }
 0x188   : > { %v614_v7 = vpop.f32.mrf.mxu0  ;;  %3228 = vmatprep.subr.mxu0 %v968_v47 }
 0x189   : > { %v4502_v55 = vadd.f32 %v4320_v14, %v614_v7  ;;  %3194 = vmatprep.mubr.f32.mxu1 %v5250_v53  ;;  %v5254_v13 = vmax.f32 %v4499_v59, 0.0  ;;  %3229 = vmatpush3.msra.mxu0 %v968_v47  ;;  %v967_v14 = vld [vmem:[#allocation8] sm:$0xff]  ;;  %v1455_v7 = vld [vmem:[#allocation5 + $0xf8] sm:$0xff]  ;;  %v1454_v53 = vld [vmem:[#allocation5 + $0xf0] sm:$0xff] }
 0x18a   : > { %3195 = vmatmul.mubr.f32.gmra.mxu1 %v5251_v1  ;;  %3230 = vmatprep.subr.mxu0 %v967_v14  ;;  %v1453_v1 = vld [vmem:[#allocation5 + $0xe8] sm:$0xff] }
 0x18b   : > { %v5253_v29 = vmax.f32 %v4502_v55, 0.0  ;;  %3231 = vmatpush3.msra.mxu0 %v967_v14  ;;  %3280 = vmatprep.subr.mxu1 %v1455_v7  ;;  %v1449_v47 = vld [vmem:[#allocation5 + $0xc8] sm:$0xff]  ;;  %v4517_v14 = vld [vmem:[%s5237_s4] ss:$0 sm:$0xff] }
 0x18c   : > { %3281 = vmatpush3.msra.mxu1 %v1455_v7 }
 0x18d   : > { %3197 = vmatprep.mubr.f32.mxu1 %v5253_v29  ;;  %3282 = vmatprep.subr.mxu1 %v1454_v53  ;;  %v1451_v29 = vld [vmem:[#allocation5 + $0xd8] sm:$0xff] }
 0x18e   : > { %3198 = vmatmul.mubr.f32.gmra.mxu1 %v5254_v13  ;;  %v1450_v13 = vld [vmem:[#allocation5 + $0xd0] sm:$0xff] }
 0x18f   : > { %3283 = vmatpush3.msra.mxu1 %v1454_v53 }
 0x190   : > { %3284 = vmatprep.subr.mxu1 %v1453_v1 }
 0x191   : > { %3285 = vmatpush3.msra.mxu1 %v1453_v1 }
 0x192   : > { %3286 = vmatprep.subr.mxu1 %v1452_v9 }
 0x193   : > { %3287 = vmatpush3.msra.mxu1 %v1452_v9 }
 0x194   : > { %3288 = vmatprep.subr.mxu1 %v1451_v29 }
 0x195   : > { %3289 = vmatpush3.msra.mxu1 %v1451_v29 }
 0x196   : > { %3290 = vmatprep.subr.mxu1 %v1450_v13 }
 0x197   : > { %3291 = vmatpush3.msra.mxu1 %v1450_v13 }
 0x198   : > { %3292 = vmatprep.subr.mxu1 %v1449_v47 }
 0x199   : > { %3293 = vmatpush3.msra.mxu1 %v1449_v47 }
 0x212   : > { %v3154_v53 = vpop.f32.mrf.mxu1 }
 0x213   : > { %v750_v7 = vadd.f32 %v3154_v53, %v4517_v14 }
 0x214   : > { %v744_v1 = vpop.f32.mrf.mxu1 }
 0x215   : > { %v745_v41 = vadd.f32 %v4517_v14, %v744_v1  ;;  %v904_v9 = vmax.f32 %v750_v7, 0.0 }
 0x216   : > { %v3157_v37 = vpop.f32.mrf.mxu1 }
 0x217   : > { %v903_v23 = vmax.f32 %v745_v41, 0.0  ;;  %v760_v29 = vadd.f32 %v3157_v37, %v4517_v14  ;;  %v936_v11 = vadd.f32 %v904_v9, %v624_v21 }
 0x218   : > { %v754_v19 = vpop.f32.mrf.mxu1 }
 0x219   : > { %v935_v13 = vadd.f32 %v903_v23, %v623_v20  ;;  %v755_v47 = vadd.f32 %v4517_v14, %v754_v19  ;;  %v906_v10 = vmax.f32 %v760_v29, 0.0 }
 0x21a   : > { %v3160_v5 = vpop.f32.mrf.mxu1 }
 0x21b   : > { %v905_v53 = vmax.f32 %v755_v47, 0.0  ;;  %v770_v4 = vadd.f32 %v3160_v5, %v4517_v14  ;;  %3232 = vmatprep.mubr.f32.mxu0 %v935_v13  ;;  %v938_v18 = vadd.f32 %v906_v10, %v626_v27 }
 0x21c   : > { %v764_v7 = vpop.f32.mrf.mxu1  ;;  %3233 = vmatmul.mubr.f32.vlgmr.msra.gmra.mxu0 %v936_v11 }
 0x21d   : > { %v937_v37 = vadd.f32 %v905_v53, %v625_v26  ;;  %v765_v41 = vadd.f32 %v4517_v14, %v764_v7  ;;  %v908_v20 = vmax.f32 %v770_v4, 0.0 }
 0x21e   : > { %v3163_v19 = vpop.f32.mrf.mxu1 }
 0x21f   : > { %v907_v16 = vmax.f32 %v765_v41, 0.0  ;;  %v780_v21 = vadd.f32 %v3163_v19, %v4517_v14  ;;  %3235 = vmatprep.mubr.f32.mxu0 %v937_v37  ;;  %v940_v24 = vadd.f32 %v908_v20, %v628_v33 }
 0x220   : > { %v774_v23 = vpop.f32.mrf.mxu1  ;;  %3236 = vmatmul.mubr.f32.gmra.mxu0 %v938_v18 }
 0x221   : > { %v939_v5 = vadd.f32 %v907_v16, %v627_v32  ;;  %v775_v11 = vadd.f32 %v4517_v14, %v774_v23  ;;  %v910_v26 = vmax.f32 %v780_v21, 0.0 }
 0x222   : > { %v3166_v1 = vpop.f32.mrf.mxu1 }
 0x223   : > { %v909_v22 = vmax.f32 %v775_v11, 0.0  ;;  %v790_v27 = vadd.f32 %v3166_v1, %v4517_v14  ;;  %3238 = vmatprep.mubr.f32.mxu0 %v939_v5  ;;  %v942_v30 = vadd.f32 %v910_v26, %v630_v39 }
 0x224   : > { %v784_v4 = vpop.f32.mrf.mxu1  ;;  %3239 = vmatmul.mubr.f32.gmra.mxu0 %v940_v24 }
 0x225   : > { %v941_v10 = vadd.f32 %v909_v22, %v629_v38  ;;  %v785_v9 = vadd.f32 %v4517_v14, %v784_v4  ;;  %v912_v32 = vmax.f32 %v790_v27, 0.0  ;;  %v5329_v22 = vmax.f32 %v4418_v2, 0.0 }
 0x226   : > { %v3169_v29 = vpop.f32.mrf.mxu1  ;;  %v5332_v2 = vmax.f32 %v4427_v6, 0.0 }
 0x227   : > { %v911_v28 = vmax.f32 %v785_v9, 0.0  ;;  %v800_v33 = vadd.f32 %v3169_v29, %v4517_v14  ;;  %3241 = vmatprep.mubr.f32.mxu0 %v941_v10  ;;  %v944_v36 = vadd.f32 %v912_v32, %v632_v45  ;;  %v5331_v32 = vmax.f32 %v4430_v8, 0.0 }
 0x228   : > { %v794_v13 = vpop.f32.mrf.mxu1  ;;  %3242 = vmatmul.mubr.f32.gmra.mxu0 %v942_v30  ;;  %v5334_v8 = vmax.f32 %v4439_v12, 0.0 }
 0x229   : > { %v943_v47 = vadd.f32 %v911_v28, %v631_v44  ;;  %v795_v53 = vadd.f32 %v4517_v14, %v794_v13  ;;  %v914_v38 = vmax.f32 %v800_v33, 0.0 }
 0x22a   : > { %v3172_v7 = vpop.f32.mrf.mxu1 }
 0x22b   : > { %v913_v34 = vmax.f32 %v795_v53, 0.0  ;;  %v810_v39 = vadd.f32 %v3172_v7, %v4517_v14  ;;  %3244 = vmatprep.mubr.f32.mxu0 %v943_v47  ;;  %v946_v42 = vadd.f32 %v914_v38, %v634_v51  ;;  %v5333_v38 = vmax.f32 %v4442_v15, 0.0 }
 0x22c   : > { %v804_v37 = vpop.f32.mrf.mxu1  ;;  %3245 = vmatmul.mubr.f32.gmra.mxu0 %v944_v36  ;;  %v5336_v15 = vmax.f32 %v4451_v25, 0.0 }
 0x22d   : > { %v945_v41 = vadd.f32 %v913_v34, %v633_v50  ;;  %v805_v18 = vadd.f32 %v4517_v14, %v804_v37  ;;  %v916_v44 = vmax.f32 %v810_v39, 0.0 }
 0x22e   : > { %v3175_v20 = vpop.f32.mrf.mxu1 }
 0x22f   : > { %v915_v40 = vmax.f32 %v805_v18, 0.0  ;;  %v820_v45 = vadd.f32 %v3175_v20, %v4517_v14  ;;  %3247 = vmatprep.mubr.f32.mxu0 %v945_v41  ;;  %v948_v48 = vadd.f32 %v916_v44, %v636_v57  ;;  %v5335_v44 = vmax.f32 %v4454_v31, 0.0 }
 0x230   : > { %v814_v19 = vpop.f32.mrf.mxu1  ;;  %3248 = vmatmul.mubr.f32.gmra.mxu0 %v946_v42  ;;  %v5338_v31 = vmax.f32 %v4463_v43, 0.0 }
 0x231   : > { %v947_v16 = vadd.f32 %v915_v40, %v635_v56  ;;  %v815_v21 = vadd.f32 %v4517_v14, %v814_v19  ;;  %v918_v50 = vmax.f32 %v820_v45, 0.0 }
 0x232   : > { %v3178_v23 = vpop.f32.mrf.mxu1 }
 0x233   : > { %v917_v46 = vmax.f32 %v815_v21, 0.0  ;;  %v830_v51 = vadd.f32 %v3178_v23, %v4517_v14  ;;  %3250 = vmatprep.mubr.f32.mxu0 %v947_v16  ;;  %v950_v54 = vadd.f32 %v918_v50, %v638_v63  ;;  %v5337_v50 = vmax.f32 %v4466_v49, 0.0 }
 0x234   : > { %v824_v5 = vpop.f32.mrf.mxu1  ;;  %3251 = vmatmul.mubr.f32.gmra.mxu0 %v948_v48  ;;  %v5340_v49 = vmax.f32 %v4475_v61, 0.0  ;;  %v5343_v61 = vmax.f32 %v4502_v55, 0.0  ;;  %v1443_v55 = vld [vmem:[#allocation5 + $0x98] sm:$0xff] }
 0x235   : > { %v949_v11 = vadd.f32 %v917_v46, %v637_v62  ;;  %v825_v24 = vadd.f32 %v4517_v14, %v824_v5  ;;  %v920_v56 = vmax.f32 %v830_v51, 0.0 }
 0x236   : > { %v3181_v26 = vpop.f32.mrf.mxu1 }
 0x237   : > { %v919_v52 = vmax.f32 %v825_v24, 0.0  ;;  %v840_v57 = vadd.f32 %v3181_v26, %v4517_v14  ;;  %3253 = vmatprep.mubr.f32.mxu0 %v949_v11  ;;  %v952_v62 = vadd.f32 %v920_v56, %v5330_v60  ;;  %v5339_v56 = vmax.f32 %v4478_v3, 0.0 }
 0x238   : > { %v834_v1 = vpop.f32.mrf.mxu1  ;;  %3254 = vmatmul.mubr.f32.gmra.mxu0 %v950_v54  ;;  %v5341_v60 = vmax.f32 %v4490_v35, 0.0  ;;  %v5342_v3 = vmax.f32 %v4487_v17, 0.0  ;;  %v1447_v35 = vld [vmem:[#allocation5 + $0xb8] sm:$0xff]  ;;  %v1446_v17 = vld [vmem:[#allocation5 + $0xb0] sm:$0xff] }
 0x239   : > { %v951_v27 = vadd.f32 %v919_v52, %v5329_v22  ;;  %v835_v4 = vadd.f32 %v4517_v14, %v834_v1  ;;  %v922_v10 = vmax.f32 %v840_v57, 0.0 }
 0x23a   : > { %v3184_v9 = vpop.f32.mrf.mxu1 }
 0x23b   : > { %v921_v58 = vmax.f32 %v835_v4, 0.0  ;;  %v850_v63 = vadd.f32 %v3184_v9, %v4517_v14  ;;  %3256 = vmatprep.mubr.f32.mxu0 %v951_v27  ;;  %v954_v33 = vadd.f32 %v922_v10, %v5332_v2  ;;  %v1444_v2 = vld [vmem:[#allocation5 + $0xa0] sm:$0xff] }
 0x23c   : > { %v844_v30 = vpop.f32.mrf.mxu1  ;;  %3257 = vmatmul.mubr.f32.gmra.mxu0 %v952_v62 }
 0x23d   : > { %v953_v29 = vadd.f32 %v921_v58, %v5331_v32  ;;  %v845_v28 = vadd.f32 %v4517_v14, %v844_v30  ;;  %v924_v13 = vmax.f32 %v850_v63, 0.0  ;;  %v5344_v32 = vmax.f32 %v4499_v59, 0.0  ;;  %v1442_v59 = vld [vmem:[#allocation5 + $0x90] sm:$0xff] }
 0x23e   : > { %v3187_v47 = vpop.f32.mrf.mxu1 }
 0x23f   : > { %v923_v0 = vmax.f32 %v845_v28, 0.0  ;;  %v860_v53 = vadd.f32 %v3187_v47, %v4517_v14  ;;  %3259 = vmatprep.mubr.f32.mxu0 %v953_v29  ;;  %v956_v39 = vadd.f32 %v924_v13, %v5334_v8  ;;  %v1448_v28 = vld [vmem:[#allocation5 + $0xc0] sm:$0xff]  ;;  %v1737_v47 = vld [vmem:[#allocation7 + $0xf8] sm:$0xff] }
 0x240   : > { %v854_v36 = vpop.f32.mrf.mxu1  ;;  %3260 = vmatmul.mubr.f32.gmra.mxu0 %v954_v33  ;;  %3294 = vmatprep.subr.mxu1 %v1448_v28  ;;  %v1441_v33 = vld [vmem:[#allocation5 + $0x88] sm:$0xff]  ;;  %v1440_v13 = vld [vmem:[#allocation5 + $0x80] sm:$0xff] }
 0x241   : > { %v955_v7 = vadd.f32 %v923_v0, %v5333_v38  ;;  %v855_v34 = vadd.f32 %v4517_v14, %v854_v36  ;;  %v926_v37 = vmax.f32 %v860_v53, 0.0  ;;  %3295 = vmatpush3.msra.mxu1 %v1448_v28  ;;  %v1736_v0 = vld [vmem:[#allocation7 + $0xf0] sm:$0xff]  ;;  %3360 = vmatprep.subr.mxu0 %v1737_v47  ;;  %v1735_v53 = vld [vmem:[#allocation7 + $0xe8] sm:$0xff]  ;;  %v1734_v36 = vld [vmem:[#allocation7 + $0xe0] sm:$0xff] }
 0x242   : > { %v3190_v41 = vpop.f32.mrf.mxu1  ;;  %3296 = vmatprep.subr.mxu1 %v1447_v35  ;;  %3361 = vmatpush3.msra.mxu0 %v1737_v47  ;;  %v1733_v38 = vld [vmem:[#allocation7 + $0xd8] sm:$0xff]  ;;  %v1730_v8 = vld [vmem:[#allocation7 + $0xc0] sm:$0xff] }
 0x243   : > { %v925_v6 = vmax.f32 %v855_v34, 0.0  ;;  %v870_v18 = vadd.f32 %v3190_v41, %v4517_v14  ;;  %3262 = vmatprep.mubr.f32.mxu0 %v955_v7  ;;  %v958_v45 = vadd.f32 %v926_v37, %v5336_v15  ;;  %3297 = vmatpush3.msra.mxu1 %v1447_v35  ;;  %v1732_v7 = vld [vmem:[#allocation7 + $0xd0] sm:$0xff]  ;;  %v1731_v34 = vld [vmem:[#allocation7 + $0xc8] sm:$0xff] }
 0x244   : > { %v864_v42 = vpop.f32.mrf.mxu1  ;;  %3263 = vmatmul.mubr.f32.gmra.mxu0 %v956_v39  ;;  %3298 = vmatprep.subr.mxu1 %v1446_v17  ;;  %v1729_v39 = vld [vmem:[#allocation7 + $0xb8] sm:$0xff]  ;;  %v1728_v37 = vld [vmem:[#allocation7 + $0xb0] sm:$0xff]  ;;  %v1727_v41 = vld [vmem:[#allocation7 + $0xa8] sm:$0xff] }
 0x245   : > { %v957_v20 = vadd.f32 %v925_v6, %v5335_v44  ;;  %v865_v40 = vadd.f32 %v4517_v14, %v864_v42  ;;  %v928_v19 = vmax.f32 %v870_v18, 0.0  ;;  %3299 = vmatpush3.msra.mxu1 %v1446_v17  ;;  %3362 = vmatprep.subr.mxu0 %v1736_v0  ;;  %v1726_v6 = vld [vmem:[#allocation7 + $0xa0] sm:$0xff]  ;;  %v1725_v18 = vld [vmem:[#allocation7 + $0x98] sm:$0xff]  ;;  %v1724_v42 = vld [vmem:[#allocation7 + $0x90] sm:$0xff] }
 0x246   : > { %v3193_v16 = vpop.f32.mrf.mxu1  ;;  %3363 = vmatpush3.msra.mxu0 %v1736_v0  ;;  %v4618_v44 = vld [vmem:[%s5239_s6] ss:$0 sm:$0xff] }
 0x247   : > { %v927_v12 = vmax.f32 %v865_v40, 0.0  ;;  %v880_v21 = vadd.f32 %v3193_v16, %v4517_v14  ;;  %3265 = vmatprep.mubr.f32.mxu0 %v957_v20  ;;  %v960_v51 = vadd.f32 %v928_v19, %v5338_v31  ;;  %3364 = vmatprep.subr.mxu0 %v1735_v53  ;;  %v1723_v20 = vld [vmem:[#allocation7 + $0x88] sm:$0xff] }
 0x248   : > { %v874_v48 = vpop.f32.mrf.mxu1  ;;  %3266 = vmatmul.mubr.f32.gmra.mxu0 %v958_v45 }
 0x249   : > { %v959_v23 = vadd.f32 %v927_v12, %v5337_v50  ;;  %v875_v46 = vadd.f32 %v4517_v14, %v874_v48  ;;  %v930_v5 = vmax.f32 %v880_v21, 0.0  ;;  %3365 = vmatpush3.msra.mxu0 %v1735_v53 }
 0x24a   : > { %v3196_v11 = vpop.f32.mrf.mxu1  ;;  %3366 = vmatprep.subr.mxu0 %v1734_v36 }
 0x24b   : > { %v929_v25 = vmax.f32 %v875_v46, 0.0  ;;  %v890_v24 = vadd.f32 %v3196_v11, %v4517_v14  ;;  %3268 = vmatprep.mubr.f32.mxu0 %v959_v23  ;;  %v962_v57 = vadd.f32 %v930_v5, %v5340_v49  ;;  %3367 = vmatpush3.msra.mxu0 %v1734_v36 }
 0x24c   : > { %v884_v54 = vpop.f32.mrf.mxu1  ;;  %3269 = vmatmul.mubr.f32.gmra.mxu0 %v960_v51  ;;  %3368 = vmatprep.subr.mxu0 %v1733_v38 }
 0x24d   : > { %v961_v26 = vadd.f32 %v929_v25, %v5339_v56  ;;  %v885_v52 = vadd.f32 %v4517_v14, %v884_v54  ;;  %v932_v1 = vmax.f32 %v890_v24, 0.0  ;;  %3369 = vmatpush3.msra.mxu0 %v1733_v38 }
 0x24e   : > { %v3199_v22 = vpop.f32.mrf.mxu1  ;;  %3370 = vmatprep.subr.mxu0 %v1732_v7 }
 0x24f   : > { %v931_v43 = vmax.f32 %v885_v52, 0.0  ;;  %v900_v27 = vadd.f32 %v3199_v22, %v4517_v14  ;;  %3271 = vmatprep.mubr.f32.mxu0 %v961_v26  ;;  %v964_v9 = vadd.f32 %v932_v1, %v5342_v3  ;;  %3371 = vmatpush3.msra.mxu0 %v1732_v7 }
 0x250   : > { %v894_v4 = vpop.f32.mrf.mxu1  ;;  %3272 = vmatmul.mubr.f32.gmra.mxu0 %v962_v57  ;;  %3372 = vmatprep.subr.mxu0 %v1731_v34 }
 0x251   : > { %v963_v62 = vadd.f32 %v931_v43, %v5341_v60  ;;  %v895_v10 = vadd.f32 %v4517_v14, %v894_v4  ;;  %v934_v58 = vmax.f32 %v900_v27, 0.0  ;;  %v1445_v14 = vld [vmem:[#allocation5 + $0xa8] sm:$0xff]  ;;  %3373 = vmatpush3.msra.mxu0 %v1731_v34 }
 0x252   : > { %3300 = vmatprep.subr.mxu1 %v1445_v14  ;;  %3374 = vmatprep.subr.mxu0 %v1730_v8 }
 0x253   : > { %v933_v63 = vmax.f32 %v895_v10, 0.0  ;;  %3274 = vmatprep.mubr.f32.mxu0 %v963_v62  ;;  %v966_v29 = vadd.f32 %v934_v58, %v5344_v32  ;;  %3301 = vmatpush3.msra.mxu1 %v1445_v14 }
 0x254   : > { %3275 = vmatmul.mubr.f32.gmra.mxu0 %v964_v9  ;;  %3302 = vmatprep.subr.mxu1 %v1444_v2 }
 0x255   : > { %v965_v30 = vadd.f32 %v933_v63, %v5343_v61  ;;  %3303 = vmatpush3.msra.mxu1 %v1444_v2  ;;  %3375 = vmatpush3.msra.mxu0 %v1730_v8 }
 0x256   : > { %3304 = vmatprep.subr.mxu1 %v1443_v55  ;;  %3376 = vmatprep.subr.mxu0 %v1729_v39 }
 0x257   : > { %3277 = vmatprep.mubr.f32.mxu0 %v965_v30  ;;  %3305 = vmatpush3.msra.mxu1 %v1443_v55 }
 0x258   : > { %3278 = vmatmul.mubr.f32.gmra.mxu0 %v966_v29  ;;  %3306 = vmatprep.subr.mxu1 %v1442_v59 }
 0x259   : > { %3307 = vmatpush3.msra.mxu1 %v1442_v59  ;;  %3377 = vmatpush3.msra.mxu0 %v1729_v39 }
 0x25a   : > { %3308 = vmatprep.subr.mxu1 %v1441_v33  ;;  %3378 = vmatprep.subr.mxu0 %v1728_v37 }
 0x25b   : > { %3309 = vmatpush3.msra.mxu1 %v1441_v33  ;;  %3379 = vmatpush3.msra.mxu0 %v1728_v37 }
 0x25c   : > { %3310 = vmatprep.subr.mxu1 %v1440_v13  ;;  %3380 = vmatprep.subr.mxu0 %v1727_v41 }
 0x25d   : > { %3311 = vmatpush3.msra.mxu1 %v1440_v13  ;;  %3381 = vmatpush3.msra.mxu0 %v1727_v41 }
 0x25e   : > { %3382 = vmatprep.subr.mxu0 %v1726_v6 }
 0x25f   : > { %3383 = vmatpush3.msra.mxu0 %v1726_v6 }
 0x260   : > { %3384 = vmatprep.subr.mxu0 %v1725_v18 }
 0x261   : > { %3385 = vmatpush3.msra.mxu0 %v1725_v18 }
 0x262   : > { %3386 = vmatprep.subr.mxu0 %v1724_v42 }
 0x263   : > { %3387 = vmatpush3.msra.mxu0 %v1724_v42 }
 0x264   : > { %3388 = vmatprep.subr.mxu0 %v1723_v20 }
 0x265   : > { %3389 = vmatpush3.msra.mxu0 %v1723_v20 }
 0x2dc   : > { %v3234_v40 = vpop.f32.mrf.mxu0 }
 0x2dd   : > { %v1062_v15 = vadd.f32 %v3234_v40, %v4618_v44 }
 0x2de   : > { %v1056_v45 = vpop.f32.mrf.mxu0 }
 0x2df   : > { %v2676_v19 = vmul.f32 -1.442695, %v1062_v15  ;;  %v1057_v16 = vadd.f32 %v4618_v44, %v1056_v45 }
 0x2e0   : > { %v3237_v12 = vpop.f32.mrf.mxu0 }
 0x2e1   : > { %3601 = vpow2.f32 %v2676_v19  ;;  %v2675_v21 = vmul.f32 -1.442695, %v1057_v16  ;;  %v1072_v48 = vadd.f32 %v3237_v12, %v4618_v44 }
 0x2e2   : > { %v1066_v50 = vpop.f32.mrf.mxu0 }
 0x2e3   : > { %3603 = vpow2.f32 %v2675_v21  ;;  %v2678_v23 = vmul.f32 -1.442695, %v1072_v48  ;;  %v1067_v46 = vadd.f32 %v4618_v44, %v1066_v50 }
 0x2e4   : > { %v3240_v31 = vpop.f32.mrf.mxu0 }
 0x2e5   : > { %3605 = vpow2.f32 %v2678_v23  ;;  %v2677_v51 = vmul.f32 -1.442695, %v1067_v46  ;;  %v1082_v5 = vadd.f32 %v3240_v31, %v4618_v44 }
 0x2e6   : > { %v1076_v11 = vpop.f32.mrf.mxu0 }
 0x2e7   : > { %3607 = vpow2.f32 %v2677_v51  ;;  %v2680_v25 = vmul.f32 -1.442695, %v1082_v5  ;;  %v1077_v24 = vadd.f32 %v4618_v44, %v1076_v11  ;;  %v3857_v11 = vld [vmem:[%s4271_s12] sm:$0xff] }
 0x2e8   : > { %v3243_v54 = vpop.f32.mrf.mxu0 }
 0x2e9   : > { %3609 = vpow2.f32 %v2680_v25  ;;  %v2679_v56 = vmul.f32 -1.442695, %v1077_v24  ;;  %v1092_v26 = vadd.f32 %v3243_v54, %v4618_v44 }
 0x2ea   : > { %v1086_v52 = vpop.f32.mrf.mxu0 }
 0x2eb   : > { %3611 = vpow2.f32 %v2679_v56  ;;  %v2682_v49 = vmul.f32 -1.442695, %v1092_v26  ;;  %v1087_v57 = vadd.f32 %v4618_v44, %v1086_v52  ;;  %v3858_v26 = vld [vmem:[%s4271_s12 + $0x8] sm:$0xff] }
 0x2ec   : > { %v3246_v1 = vpop.f32.mrf.mxu0 }
 0x2ed   : > { %3613 = vpow2.f32 %v2682_v49  ;;  %v2681_v22 = vmul.f32 -1.442695, %v1087_v57  ;;  %v1102_v43 = vadd.f32 %v3246_v1, %v4618_v44 }
 0x2ee   : > { %v3602_v27 = vpop.eup %3601  ;;  %v1096_v4 = vpop.f32.mrf.mxu0 }
 0x2ef   : > { %v1312_v60 = vadd.f32 1.0, %v3602_v27  ;;  %3615 = vpow2.f32 %v2681_v22  ;;  %v2684_v62 = vmul.f32 -1.442695, %v1102_v43  ;;  %v1097_v10 = vadd.f32 %v4618_v44, %v1096_v4 }
 0x2f0   : > { %v3604_v3 = vpop.eup %3603  ;;  %v3249_v9 = vpop.f32.mrf.mxu0 }
 0x2f1   : > { %3617 = vrcp.f32 %v1312_v60  ;;  %v1311_v58 = vadd.f32 1.0, %v3604_v3  ;;  %v2683_v63 = vmul.f32 -1.442695, %v1097_v10  ;;  %v1112_v61 = vadd.f32 %v3249_v9, %v4618_v44  ;;  %v3859_v10 = vld [vmem:[%s4271_s12 + $0x10] sm:$0xff] }
 0x2f2   : > { %v3606_v30 = vpop.eup %3605  ;;  %3619 = vpow2.f32 %v2684_v62  ;;  %v1106_v32 = vpop.f32.mrf.mxu0 }
 0x2f3   : > { %3621 = vrcp.f32 %v1311_v58  ;;  %v1314_v29 = vadd.f32 1.0, %v3606_v30  ;;  %v2686_v28 = vmul.f32 -1.442695, %v1112_v61  ;;  %v1107_v35 = vadd.f32 %v4618_v44, %v1106_v32  ;;  %v3860_v61 = vld [vmem:[%s4271_s12 + $0x18] sm:$0xff] }
 0x2f4   : > { %v3608_v17 = vpop.eup %3607  ;;  %3623 = vpow2.f32 %v2683_v63  ;;  %v3252_v14 = vpop.f32.mrf.mxu0 }
 0x2f5   : > { %3625 = vrcp.f32 %v1314_v29  ;;  %v1313_v2 = vadd.f32 1.0, %v3608_v17  ;;  %v2685_v55 = vmul.f32 -1.442695, %v1107_v35  ;;  %v1122_v59 = vadd.f32 %v3252_v14, %v4618_v44 }
 0x2f6   : > { %v3610_v33 = vpop.eup %3609  ;;  %3627 = vpow2.f32 %v2686_v28  ;;  %v1116_v13 = vpop.f32.mrf.mxu0 }
 0x2f7   : > { %3629 = vrcp.f32 %v1313_v2  ;;  %v1316_v47 = vadd.f32 1.0, %v3610_v33  ;;  %v2688_v0 = vmul.f32 -1.442695, %v1122_v59  ;;  %v1117_v53 = vadd.f32 %v4618_v44, %v1116_v13  ;;  %v3861_v33 = vld [vmem:[%s4271_s12 + $0x20] sm:$0xff] }
 0x2f8   : > { %v3612_v36 = vpop.eup %3611  ;;  %3631 = vpow2.f32 %v2685_v55  ;;  %v3255_v38 = vpop.f32.mrf.mxu0 }
 0x2f9   : > { %3633 = vrcp.f32 %v1316_v47  ;;  %v1315_v7 = vadd.f32 1.0, %v3612_v36  ;;  %v2687_v34 = vmul.f32 -1.442695, %v1117_v53  ;;  %v1132_v8 = vadd.f32 %v3255_v38, %v4618_v44  ;;  %v3862_v36 = vld [vmem:[%s4271_s12 + $0x28] sm:$0xff] }
 0x2fa   : > { %v3614_v39 = vpop.eup %3613  ;;  %3635 = vpow2.f32 %v2688_v0  ;;  %v1126_v37 = vpop.f32.mrf.mxu0 }
 0x2fb   : > { %3637 = vrcp.f32 %v1315_v7  ;;  %v1318_v41 = vadd.f32 1.0, %v3614_v39  ;;  %v2690_v6 = vmul.f32 -1.442695, %v1132_v8  ;;  %v1127_v18 = vadd.f32 %v4618_v44, %v1126_v37 }
 0x2fc   : > { %v3616_v42 = vpop.eup %3615  ;;  %3639 = vpow2.f32 %v2687_v34  ;;  %v3258_v20 = vpop.f32.mrf.mxu0 }
 0x2fd   : > { %3641 = vrcp.f32 %v1318_v41  ;;  %v1317_v40 = vadd.f32 1.0, %v3616_v42  ;;  %v2689_v15 = vmul.f32 -1.442695, %v1127_v18  ;;  %v1142_v45 = vadd.f32 %v3258_v20, %v4618_v44  ;;  %v3863_v20 = vld [vmem:[%s4271_s12 + $0x30] sm:$0xff] }
 0x2fe   : > { %v3618_v19 = vpop.eup %3617  ;;  %3643 = vpow2.f32 %v2690_v6  ;;  %v1136_v16 = vpop.f32.mrf.mxu0 }
 0x2ff   : > { %v3620_v12 = vpop.eup %3619  ;;  %3645 = vrcp.f32 %v1317_v40  ;;  %v2692_v21 = vmul.f32 -1.442695, %v1142_v45  ;;  %v1137_v48 = vadd.f32 %v4618_v44, %v1136_v16  ;;  %v4643_v52 = vadd.f32 %v3858_v26, %v3618_v19  ;;  %v3864_v16 = vld [vmem:[%s4271_s12 + $0x38] sm:$0xff]  ;;  %v3865_v26 = vld [vmem:[%s4271_s12 + $0x40] sm:$0xff] }
 0x300   : > { %v3622_v50 = vpop.eup %3621  ;;  %v1320_v23 = vadd.f32 1.0, %v3620_v12  ;;  %3647 = vpow2.f32 %v2689_v15  ;;  %v3261_v46 = vpop.f32.mrf.mxu0 }
 0x301   : > { %v3624_v31 = vpop.eup %3623  ;;  %3649 = vpow2.f32 %v2692_v21  ;;  %v2691_v51 = vmul.f32 -1.442695, %v1137_v48  ;;  %v1152_v5 = vadd.f32 %v3261_v46, %v4618_v44  ;;  %v4640_v25 = vadd.f32 %v3857_v11, %v3622_v50 }
 0x302   : > { %v3626_v24 = vpop.eup %3625  ;;  %3651 = vrcp.f32 %v1320_v23  ;;  %v1319_v54 = vadd.f32 1.0, %v3624_v31  ;;  %v1146_v56 = vpop.f32.mrf.mxu0 }
 0x303   : > { %v3628_v49 = vpop.eup %3627  ;;  %3653 = vpow2.f32 %v2691_v51  ;;  %v2694_v57 = vmul.f32 -1.442695, %v1152_v5  ;;  %v1147_v1 = vadd.f32 %v4618_v44, %v1146_v56  ;;  %3312 = vmatprep.mubr.f32.mxu1 %v4640_v25  ;;  %v4653_v30 = vadd.f32 %v3860_v61, %v3626_v24 }
 0x304   : > { %v3630_v22 = vpop.eup %3629  ;;  %3655 = vrcp.f32 %v1319_v54  ;;  %v1322_v43 = vadd.f32 1.0, %v3628_v49  ;;  %v3264_v27 = vpop.f32.mrf.mxu0  ;;  %3313 = vmatmul.mubr.f32.vlgmr.msra.gmra.mxu1 %v4643_v52 }
 0x305   : > { %v3632_v4 = vpop.eup %3631  ;;  %3657 = vpow2.f32 %v2694_v57  ;;  %v2693_v60 = vmul.f32 -1.442695, %v1147_v1  ;;  %v1162_v62 = vadd.f32 %v3264_v27, %v4618_v44  ;;  %v4650_v3 = vadd.f32 %v3859_v10, %v3630_v22  ;;  %v3866_v57 = vld [vmem:[%s4271_s12 + $0x48] sm:$0xff] }
 0x306   : > { %v3634_v9 = vpop.eup %3633  ;;  %3659 = vrcp.f32 %v1322_v43  ;;  %v1321_v58 = vadd.f32 1.0, %v3632_v4  ;;  %v1156_v63 = vpop.f32.mrf.mxu0 }
 0x307   : > { %v3636_v32 = vpop.eup %3635  ;;  %3661 = vpow2.f32 %v2693_v60  ;;  %v2696_v29 = vmul.f32 -1.442695, %v1162_v62  ;;  %v1157_v28 = vadd.f32 %v4618_v44, %v1156_v63  ;;  %3315 = vmatprep.mubr.f32.mxu1 %v4650_v3  ;;  %v4663_v38 = vadd.f32 %v3862_v36, %v3634_v9 }
 0x308   : > { %v3638_v35 = vpop.eup %3637  ;;  %3663 = vrcp.f32 %v1321_v58  ;;  %v1324_v17 = vadd.f32 1.0, %v3636_v32  ;;  %v3267_v14 = vpop.f32.mrf.mxu0  ;;  %3316 = vmatmul.mubr.f32.gmra.mxu1 %v4653_v30 }
 0x309   : > { %v3640_v2 = vpop.eup %3639  ;;  %3665 = vpow2.f32 %v2696_v29  ;;  %v2695_v55 = vmul.f32 -1.442695, %v1157_v28  ;;  %v1172_v59 = vadd.f32 %v3267_v14, %v4618_v44  ;;  %v4660_v13 = vadd.f32 %v3861_v33, %v3638_v35  ;;  %v3867_v29 = vld [vmem:[%s4271_s12 + $0x50] sm:$0xff]  ;;  %v3868_v35 = vld [vmem:[%s4271_s12 + $0x58] sm:$0xff] }
 0x30a   : > { %v3642_v47 = vpop.eup %3641  ;;  %3667 = vrcp.f32 %v1324_v17  ;;  %v1323_v0 = vadd.f32 1.0, %v3640_v2  ;;  %v1166_v53 = vpop.f32.mrf.mxu0 }
 0x30b   : > { %v3644_v7 = vpop.eup %3643  ;;  %3669 = vpow2.f32 %v2695_v55  ;;  %v2698_v34 = vmul.f32 -1.442695, %v1172_v59  ;;  %v1167_v8 = vadd.f32 %v4618_v44, %v1166_v53  ;;  %3318 = vmatprep.mubr.f32.mxu1 %v4660_v13  ;;  %v4673_v12 = vadd.f32 %v3864_v16, %v3642_v47 }
 0x30c   : > { %v3646_v39 = vpop.eup %3645  ;;  %3671 = vrcp.f32 %v1323_v0  ;;  %v1326_v37 = vadd.f32 1.0, %v3644_v7  ;;  %v3270_v41 = vpop.f32.mrf.mxu0  ;;  %3319 = vmatmul.mubr.f32.gmra.mxu1 %v4663_v38 }
 0x30d   : > { %v3648_v6 = vpop.eup %3647  ;;  %3673 = vpow2.f32 %v2698_v34  ;;  %v2697_v18 = vmul.f32 -1.442695, %v1167_v8  ;;  %v1182_v42 = vadd.f32 %v3270_v41, %v4618_v44  ;;  %v4670_v40 = vadd.f32 %v3863_v20, %v3646_v39  ;;  %v3869_v39 = vld [vmem:[%s4271_s12 + $0x60] sm:$0xff]  ;;  %v3870_v41 = vld [vmem:[%s4271_s12 + $0x68] sm:$0xff] }
 0x30e   : > { %v3650_v15 = vpop.eup %3649  ;;  %3675 = vrcp.f32 %v1326_v37  ;;  %v1325_v45 = vadd.f32 1.0, %v3648_v6  ;;  %v1176_v19 = vpop.f32.mrf.mxu0 }
 0x30f   : > { %v3652_v21 = vpop.eup %3651  ;;  %v1328_v48 = vadd.f32 1.0, %v3650_v15  ;;  %3677 = vpow2.f32 %v2697_v18  ;;  %v2700_v50 = vmul.f32 -1.442695, %v1182_v42  ;;  %v1177_v23 = vadd.f32 %v4618_v44, %v1176_v19  ;;  %3321 = vmatprep.mubr.f32.mxu1 %v4670_v40 }
 0x310   : > { %v3654_v46 = vpop.eup %3653  ;;  %3679 = vrcp.f32 %v1325_v45  ;;  %v3273_v31 = vpop.f32.mrf.mxu0  ;;  %3322 = vmatmul.mubr.f32.gmra.mxu1 %v4673_v12  ;;  %v4683_v1 = vadd.f32 %v3866_v57, %v3652_v21 }
 0x311   : > { %v3656_v51 = vpop.eup %3655  ;;  %3681 = vrcp.f32 %v1328_v48  ;;  %v1327_v5 = vadd.f32 1.0, %v3654_v46  ;;  %v2699_v11 = vmul.f32 -1.442695, %v1177_v23  ;;  %v1192_v24 = vadd.f32 %v3273_v31, %v4618_v44 }
 0x312   : > { %v3658_v54 = vpop.eup %3657  ;;  %3683 = vpow2.f32 %v2700_v50  ;;  %v1186_v56 = vpop.f32.mrf.mxu0  ;;  %v4680_v49 = vadd.f32 %v3865_v26, %v3656_v51  ;;  %v3871_v50 = vld [vmem:[%s4271_s12 + $0x70] sm:$0xff] }
 0x313   : > { %v3660_v22 = vpop.eup %3659  ;;  %3685 = vrcp.f32 %v1327_v5  ;;  %v1330_v43 = vadd.f32 1.0, %v3658_v54  ;;  %v2702_v27 = vmul.f32 -1.442695, %v1192_v24  ;;  %v1187_v4 = vadd.f32 %v4618_v44, %v1186_v56  ;;  %v3873_v24 = vld [vmem:[%s4271_s12 + $0x80] sm:$0xff] }
 0x314   : > { %v3662_v60 = vpop.eup %3661  ;;  %3687 = vpow2.f32 %v2699_v11  ;;  %3324 = vmatprep.mubr.f32.mxu1 %v4680_v49  ;;  %v3276_v62 = vpop.f32.mrf.mxu0  ;;  %v4693_v17 = vadd.f32 %v3868_v35, %v3660_v22  ;;  %v3874_v22 = vld [vmem:[%s4271_s12 + $0x88] sm:$0xff] }
 0x315   : > { %v3664_v10 = vpop.eup %3663  ;;  %3689 = vrcp.f32 %v1330_v43  ;;  %v1329_v9 = vadd.f32 1.0, %v3662_v60  ;;  %v2701_v58 = vmul.f32 -1.442695, %v1187_v4  ;;  %v1202_v63 = vadd.f32 %v3276_v62, %v4618_v44  ;;  %3325 = vmatmul.mubr.f32.gmra.mxu1 %v4683_v1  ;;  %v3875_v62 = vld [vmem:[%s4271_s12 + $0x90] sm:$0xff] }
 0x316   : > { %v3666_v61 = vpop.eup %3665  ;;  %3691 = vpow2.f32 %v2702_v27  ;;  %v1196_v32 = vpop.f32.mrf.mxu0  ;;  %v4690_v28 = vadd.f32 %v3867_v29, %v3664_v10 }
 0x317   : > { %v3668_v14 = vpop.eup %3667  ;;  %3693 = vrcp.f32 %v1329_v9  ;;  %v1332_v2 = vadd.f32 1.0, %v3666_v61  ;;  %v2704_v55 = vmul.f32 -1.442695, %v1202_v63  ;;  %v1197_v59 = vadd.f32 %v4618_v44, %v1196_v32  ;;  %v3876_v61 = vld [vmem:[%s4271_s12 + $0x98] sm:$0xff] }
 0x318   : > { %v3670_v33 = vpop.eup %3669  ;;  %3695 = vpow2.f32 %v2701_v58  ;;  %3327 = vmatprep.mubr.f32.mxu1 %v4690_v28  ;;  %v3279_v47 = vpop.f32.mrf.mxu0  ;;  %v4703_v6 = vadd.f32 %v3870_v41, %v3668_v14 }
 0x319   : > { %v3672_v0 = vpop.eup %3671  ;;  %3697 = vrcp.f32 %v1332_v2  ;;  %v1331_v53 = vadd.f32 1.0, %v3670_v33  ;;  %v2703_v36 = vmul.f32 -1.442695, %v1197_v59  ;;  %v1212_v7 = vadd.f32 %v3279_v47, %v4618_v44  ;;  %3328 = vmatmul.mubr.f32.gmra.mxu1 %v4693_v17  ;;  %v3877_v2 = vld [vmem:[%s4271_s12 + $0xa0] sm:$0xff] }
 0x31a   : > { %v3674_v34 = vpop.eup %3673  ;;  %3699 = vpow2.f32 %v2704_v55  ;;  %v1206_v8 = vpop.f32.mrf.mxu0  ;;  %v4700_v37 = vadd.f32 %v3869_v39, %v3672_v0  ;;  %v3878_v0 = vld [vmem:[%s4271_s12 + $0xa8] sm:$0xff] }
 0x31b   : > { %v3676_v18 = vpop.eup %3675  ;;  %3701 = vrcp.f32 %v1331_v53  ;;  %v1334_v42 = vadd.f32 1.0, %v3674_v34  ;;  %v2706_v20 = vmul.f32 -1.442695, %v1212_v7  ;;  %v1207_v15 = vadd.f32 %v4618_v44, %v1206_v8  ;;  %v3872_v44 = vld [vmem:[%s4271_s12 + $0x78] sm:$0xff]  ;;  %v3879_v8 = vld [vmem:[%s4271_s12 + $0xb0] sm:$0xff] }
 0x31c   : > { %v3678_v45 = vpop.eup %3677  ;;  %3703 = vpow2.f32 %v2703_v36  ;;  %3330 = vmatprep.mubr.f32.mxu1 %v4700_v37  ;;  %v4712_v31 = vadd.f32 %v3872_v44, %v3676_v18  ;;  %v3880_v18 = vld [vmem:[%s4271_s12 + $0xb8] sm:$0xff] }
 0x31d   : > { %v3680_v19 = vpop.eup %3679  ;;  %3705 = vrcp.f32 %v1334_v42  ;;  %v1333_v16 = vadd.f32 1.0, %v3678_v45  ;;  %v2705_v21 = vmul.f32 -1.442695, %v1207_v15  ;;  %3331 = vmatmul.mubr.f32.gmra.mxu1 %v4703_v6  ;;  %v3881_v45 = vld [vmem:[%s4271_s12 + $0xc0] sm:$0xff] }
 0x31e   : > { %v3682_v48 = vpop.eup %3681  ;;  %3707 = vpow2.f32 %v2706_v20  ;;  %v4709_v23 = vadd.f32 %v3871_v50, %v3680_v19  ;;  %5346 = vst [vmem:[#allocation16_spill] sm:$0xff] %v4712_v31 }
 0x31f   : > { %v3684_v46 = vpop.eup %3683  ;;  %3709 = vrcp.f32 %v1333_v16  ;;  %v4721_v43 = vadd.f32 %v3874_v22, %v3682_v48  ;;  %v3882_v16 = vld [vmem:[%s4271_s12 + $0xc8] sm:$0xff] }
 0x320   : > { %5345 = vst [vmem:[#allocation15_spill] sm:$0xff] %v4709_v23  ;;  %v3686_v51 = vpop.eup %3685  ;;  %v1336_v5 = vadd.f32 1.0, %v3684_v46  ;;  %3711 = vpow2.f32 %v2705_v21  ;;  %3333 = vmatprep.mubr.f32.mxu1 %v4709_v23  ;;  %v3883_v46 = vld [vmem:[%s4271_s12 + $0xd0] sm:$0xff] }
 0x321   : > { %v3688_v11 = vpop.eup %3687  ;;  %3334 = vmatmul.mubr.f32.gmra.mxu1 %v4712_v31  ;;  %v4717_v54 = vadd.f32 %v3873_v24, %v3686_v51  ;;  %5348 = vst [vmem:[#allocation18_spill] sm:$0xff] %v4721_v43  ;;  %v3884_v51 = vld [vmem:[%s4271_s12 + $0xd8] sm:$0xff] }
 0x322   : > { %v3690_v56 = vpop.eup %3689  ;;  %v1335_v26 = vadd.f32 1.0, %v3688_v11  ;;  %3713 = vrcp.f32 %v1336_v5 }
 0x323   : > { %5347 = vst [vmem:[#allocation17_spill] sm:$0xff] %v4717_v54  ;;  %v3692_v57 = vpop.eup %3691  ;;  %3336 = vmatprep.mubr.f32.mxu1 %v4717_v54  ;;  %v4729_v32 = vadd.f32 %v3876_v61, %v3690_v56  ;;  %v3885_v56 = vld [vmem:[%s4271_s12 + $0xe0] sm:$0xff]  ;;  %v2051_v61 = vld [vmem:[#allocation8 + $0xf8] sm:$0xff] }
 0x324   : > { %v3694_v27 = vpop.eup %3693  ;;  %3715 = vrcp.f32 %v1335_v26  ;;  %v1338_v4 = vadd.f32 1.0, %v3692_v57  ;;  %v3886_v57 = vld [vmem:[%s4271_s12 + $0xe8] sm:$0xff]  ;;  %3440 = vmatprep.subr.mxu1 %v2051_v61 }
 0x325   : > { %v3696_v60 = vpop.eup %3695  ;;  %3337 = vmatmul.mubr.f32.gmra.mxu1 %v4721_v43  ;;  %v4725_v10 = vadd.f32 %v3875_v62, %v3694_v27  ;;  %5350 = vst [vmem:[#allocation20_spill] sm:$0xff] %v4729_v32 }
 0x326   : > { %v3698_v9 = vpop.eup %3697  ;;  %v1337_v58 = vadd.f32 1.0, %v3696_v60  ;;  %3717 = vrcp.f32 %v1338_v4  ;;  %v3887_v60 = vld [vmem:[%s4271_s12 + $0xf0] sm:$0xff]  ;;  %3441 = vmatpush3.msra.mxu1 %v2051_v61 }
 0x327   : > { %5349 = vst [vmem:[#allocation19_spill] sm:$0xff] %v4725_v10  ;;  %v3700_v63 = vpop.eup %3699  ;;  %3339 = vmatprep.mubr.f32.mxu1 %v4725_v10  ;;  %v4737_v53 = vadd.f32 %v3878_v0, %v3698_v9  ;;  %v3888_v9 = vld [vmem:[%s4271_s12 + $0xf8] sm:$0xff]  ;;  %s5104_s12 = scalar_lea.vmem [#allocation10], %s2667_s1  ;;  %s2751_s1 = sshll.u32 %s4139_s28, 12 }
 0x328   : > { %v3702_v29 = vpop.eup %3701  ;;  %3719 = vrcp.f32 %v1337_v58  ;;  %v1340_v35 = vadd.f32 1.0, %v3700_v63  ;;  %v1722_v63 = vld [vmem:[#allocation7 + $0x80] sm:$0xff]  ;;  %v2043_v0 = vld [vmem:[#allocation8 + $0xb8] sm:$0xff]  ;;  %s2555_s30 = sshll.u32 %s5104_s12, 4  ;;  %s5185_s13 = scalar_lea.hbm %s5240_s7, %s2751_s1  ;;  %s5187_s30 = int_to_ptr.vmem [resolvable:$true] %s2555_s30 }
 0x329   : > { %v3704_v14 = vpop.eup %3703  ;;  %3340 = vmatmul.mubr.f32.gmra.mxu1 %v4729_v32  ;;  %v4733_v55 = vadd.f32 %v3877_v2, %v3702_v29  ;;  %5352 = vst [vmem:[#allocation22_spill] sm:$0xff] %v4737_v53  ;;  %3390 = vmatprep.subr.mxu0 %v1722_v63  ;;  %v2050_v29 = vld [vmem:[#allocation8 + $0xf0] sm:$0xff]  ;;  %v2047_v2 = vld [vmem:[#allocation8 + $0xd8] sm:$0xff]  ;;  %s2542_s28 = scalar_lea.sflag [#allocation4], %s4265_s19  ;;  %s3995_s15 = scalar_lea.vmem %s5187_s30, 4096 }
 0x32a   : > { %v3706_v59 = vpop.eup %3705  ;;  %v1339_v33 = vadd.f32 1.0, %v3704_v14  ;;  %3721 = vrcp.f32 %v1340_v35  ;;  %3391 = vmatpush3.msra.mxu0 %v1722_v63  ;;  %v2049_v35 = vld [vmem:[#allocation8 + $0xe8] sm:$0xff]  ;;  %3442 = vmatprep.subr.mxu1 %v2050_v29  ;;  %v2048_v14 = vld [vmem:[#allocation8 + $0xe0] sm:$0xff]  ;;  %p3996_p7 = scmp.ne.s32.totalorder %s5187_s30, %s3995_s15  ;;  %p4002_p13 = scmp.lt.s32.totalorder %s5187_s30, %s4000_s11 }
 0x32b   : > { %5351 = vst [vmem:[#allocation21_spill] sm:$0xff] %v4733_v55  ;;  %v3708_v47 = vpop.eup %3707  ;;  %3342 = vmatprep.mubr.f32.mxu1 %v4733_v55  ;;  %v4745_v42 = vadd.f32 %v3880_v18, %v3706_v59  ;;  %3443 = vmatpush3.msra.mxu1 %v2050_v29  ;;  %v2046_v59 = vld [vmem:[#allocation8 + $0xd0] sm:$0xff]  ;;  %v4783_v18 = vld [vmem:[%s5235_s2 + $0x1] ss:$0 sm:$0xff]  ;;  %p4003_p0 = scmp.lt.s32.totalorder %s4001_s21, %s3995_s15 }
 0x32c   : > { %v3710_v36 = vpop.eup %3709  ;;  %3723 = vrcp.f32 %v1339_v33  ;;  %v1342_v7 = vadd.f32 1.0, %v3708_v47  ;;  %3444 = vmatprep.subr.mxu1 %v2049_v35  ;;  %v2045_v33 = vld [vmem:[#allocation8 + $0xc8] sm:$0xff]  ;;  %v2044_v47 = vld [vmem:[#allocation8 + $0xc0] sm:$0xff]  ;;  %p3997_p12 = pnand %p3996_p7, %p5413_p1 }
 0x32d   : > { %v3712_v34 = vpop.eup %3711  ;;  %3343 = vmatmul.mubr.f32.gmra.mxu1 %v4737_v53  ;;  %v4741_v39 = vadd.f32 %v3879_v8, %v3710_v36  ;;  %5354 = vst [vmem:[#allocation24_spill] sm:$0xff] %v4745_v42  ;;  %v2042_v36 = vld [vmem:[#allocation8 + $0xb0] sm:$0xff]  ;;  %v2039_v8 = vld [vmem:[#allocation8 + $0x98] sm:$0xff]  ;;  %p4004_p2 = por %p4003_p0, %p4002_p13 }
 0x32e   : > { %v1341_v41 = vadd.f32 1.0, %v3712_v34  ;;  %3725 = vrcp.f32 %v1342_v7  ;;  %3445 = vmatpush3.msra.mxu1 %v2049_v35  ;;  %v2041_v7 = vld [vmem:[#allocation8 + $0xa8] sm:$0xff]  ;;  %v2040_v34 = vld [vmem:[#allocation8 + $0xa0] sm:$0xff]  ;;  %p3998_p9 = pneg %p3997_p12 }
 0x32f   : > { %5353 = vst [vmem:[#allocation23_spill] sm:$0xff] %v4741_v39  ;;  %3345 = vmatprep.mubr.f32.mxu1 %v4741_v39  ;;  %v3714_v20 = vpop.eup %3713  ;;  %3446 = vmatprep.subr.mxu1 %v2048_v14 }
 0x330   : > { %3727 = vrcp.f32 %v1341_v41  ;;  %v4752_v21 = vadd.f32 %v3882_v16, %v3714_v20  ;;  %3447 = vmatpush3.msra.mxu1 %v2048_v14  ;;  %v2038_v41 = vld [vmem:[#allocation8 + $0x90] sm:$0xff]  ;;  %p4005_p10 = pnand %p4004_p2, %p3998_p9 }
 0x331   : > { %v3716_v15 = vpop.eup %3715  ;;  %3346 = vmatmul.mubr.f32.gmra.mxu1 %v4745_v42  ;;  %3448 = vmatprep.subr.mxu1 %v2047_v2 }
 0x332   : > { %v4749_v19 = vadd.f32 %v3881_v45, %v3716_v15  ;;  %5356 = vst [vmem:[#allocation26_spill] sm:$0xff] %v4752_v21  ;;  %3449 = vmatpush3.msra.mxu1 %v2047_v2 }
 0x333   : > { %v3718_v48 = vpop.eup %3717  ;;  %3450 = vmatprep.subr.mxu1 %v2046_v59 }
 0x334   : > { %5355 = vst [vmem:[#allocation25_spill] sm:$0xff] %v4749_v19  ;;  %3348 = vmatprep.mubr.f32.mxu1 %v4749_v19  ;;  %v4760_v5 = vadd.f32 %v3884_v51, %v3718_v48  ;;  %3451 = vmatpush3.msra.mxu1 %v2046_v59 }
 0x335   : > { %v3720_v50 = vpop.eup %3719  ;;  %3349 = vmatmul.mubr.f32.gmra.mxu1 %v4752_v21  ;;  %3452 = vmatprep.subr.mxu1 %v2045_v33 }
 0x336   : > { %v4757_v44 = vadd.f32 %v3883_v46, %v3720_v50  ;;  %5358 = vst [vmem:[#allocation28_spill] sm:$0xff] %v4760_v5  ;;  %3453 = vmatpush3.msra.mxu1 %v2045_v33 }
 0x337   : > { %v3722_v11 = vpop.eup %3721  ;;  %3454 = vmatprep.subr.mxu1 %v2044_v47 }
 0x338   : > { %5357 = vst [vmem:[#allocation27_spill] sm:$0xff] %v4757_v44  ;;  %3351 = vmatprep.mubr.f32.mxu1 %v4757_v44  ;;  %v4768_v22 = vadd.f32 %v3886_v57, %v3722_v11  ;;  %3455 = vmatpush3.msra.mxu1 %v2044_v47 }
 0x339   : > { %v3724_v24 = vpop.eup %3723  ;;  %3352 = vmatmul.mubr.f32.gmra.mxu1 %v4760_v5  ;;  %3456 = vmatprep.subr.mxu1 %v2043_v0 }
 0x33a   : > { %v4765_v26 = vadd.f32 %v3885_v56, %v3724_v24  ;;  %5360 = vst [vmem:[#allocation30_spill] sm:$0xff] %v4768_v22  ;;  %3457 = vmatpush3.msra.mxu1 %v2043_v0 }
 0x33b   : > { %v3726_v27 = vpop.eup %3725  ;;  %3458 = vmatprep.subr.mxu1 %v2042_v36 }
 0x33c   : > { %5359 = vst [vmem:[#allocation29_spill] sm:$0xff] %v4765_v26  ;;  %3354 = vmatprep.mubr.f32.mxu1 %v4765_v26  ;;  %v4776_v58 = vadd.f32 %v3888_v9, %v3726_v27  ;;  %3459 = vmatpush3.msra.mxu1 %v2042_v36 }
 0x33d   : > { %v3728_v4 = vpop.eup %3727  ;;  %3355 = vmatmul.mubr.f32.gmra.mxu1 %v4768_v22  ;;  %3460 = vmatprep.subr.mxu1 %v2041_v7 }
 0x33e   : > { %v4773_v62 = vadd.f32 %v3887_v60, %v3728_v4  ;;  %5362 = vst [vmem:[#allocation32_spill] sm:$0xff] %v4776_v58  ;;  %3461 = vmatpush3.msra.mxu1 %v2041_v7 }
 0x33f   : > { %3462 = vmatprep.subr.mxu1 %v2040_v34 }
 0x340   : > { %5361 = vst [vmem:[#allocation31_spill] sm:$0xff] %v4773_v62  ;;  %3357 = vmatprep.mubr.f32.mxu1 %v4773_v62  ;;  %3463 = vmatpush3.msra.mxu1 %v2040_v34 }
 0x341   : > { %3358 = vmatmul.mubr.f32.gmra.mxu1 %v4776_v58  ;;  %3464 = vmatprep.subr.mxu1 %v2039_v8 }
 0x342   : > { %3465 = vmatpush3.msra.mxu1 %v2039_v8 }
 0x343   : > { %3466 = vmatprep.subr.mxu1 %v2038_v41 }
 0x344   : > { %3467 = vmatpush3.msra.mxu1 %v2038_v41 }
 0x3c4   : > { %v3314_v20 = vpop.f32.mrf.mxu1 }
 0x3c5   : > { %v4786_v15 = vadd.f32 %v3314_v20, %v4783_v18 }
 0x3c6   : > { %v1530_v45 = vpop.f32.mrf.mxu1 }
 0x3c7   : > { %v4789_v16 = vadd.f32 %v4783_v18, %v1530_v45  ;;  %v5279_v46 = vmax.f32 %v4786_v15, 0.0  ;;  %v5364_v32 = vmax.f32 %v4786_v15, 0.0 }
 0x3c8   : > { %v3317_v48 = vpop.f32.mrf.mxu1 }
 0x3c9   : > { %v5280_v50 = vmax.f32 %v4789_v16, 0.0  ;;  %v4794_v51 = vadd.f32 %v3317_v48, %v4783_v18  ;;  %v5363_v53 = vmax.f32 %v4789_v16, 0.0 }
 0x3ca   : > { %v1540_v11 = vpop.f32.mrf.mxu1 }
 0x3cb   : > { %v4797_v24 = vadd.f32 %v4783_v18, %v1540_v11  ;;  %3392 = vmatprep.mubr.f32.mxu0 %v5280_v50  ;;  %v5275_v27 = vmax.f32 %v4794_v51, 0.0 }
 0x3cc   : > { %v3320_v56 = vpop.f32.mrf.mxu1  ;;  %3393 = vmatmul.mubr.f32.vlgmr.msra.gmra.mxu0 %v5279_v46 }
 0x3cd   : > { %v5276_v57 = vmax.f32 %v4797_v24, 0.0  ;;  %v4806_v4 = vadd.f32 %v3320_v56, %v4783_v18 }
 0x3ce   : > { %v1550_v60 = vpop.f32.mrf.mxu1 }
 0x3cf   : > { %v4809_v9 = vadd.f32 %v4783_v18, %v1550_v60  ;;  %3395 = vmatprep.mubr.f32.mxu0 %v5276_v57  ;;  %v5271_v29 = vmax.f32 %v4806_v4, 0.0 }
 0x3d0   : > { %v3323_v63 = vpop.f32.mrf.mxu1  ;;  %3396 = vmatmul.mubr.f32.gmra.mxu0 %v5275_v27 }
 0x3d1   : > { %v5272_v61 = vmax.f32 %v4809_v9, 0.0  ;;  %v4818_v35 = vadd.f32 %v3323_v63, %v4783_v18 }
 0x3d2   : > { %v1560_v14 = vpop.f32.mrf.mxu1 }
 0x3d3   : > { %v4821_v2 = vadd.f32 %v4783_v18, %v1560_v14  ;;  %3398 = vmatprep.mubr.f32.mxu0 %v5272_v61  ;;  %v5267_v47 = vmax.f32 %v4818_v35, 0.0 }
 0x3d4   : > { %3399 = vmatmul.mubr.f32.gmra.mxu0 %v5271_v29 }
 0x3d5   : > { %v5268_v59 = vmax.f32 %v4821_v2, 0.0  ;;  %v3326_v33 = vpop.f32.mrf.mxu1 }
 0x3d6   : > { %v4830_v0 = vadd.f32 %v3326_v33, %v4783_v18 }
 0x3d7   : > { %v1570_v36 = vpop.f32.mrf.mxu1  ;;  %3401 = vmatprep.mubr.f32.mxu0 %v5268_v59 }
 0x3d8   : > { %v4835_v7 = vadd.f32 %v4783_v18, %v1570_v36  ;;  %3402 = vmatmul.mubr.f32.gmra.mxu0 %v5267_v47  ;;  %v5263_v41 = vmax.f32 %v4830_v0, 0.0 }
 0x3d9   : > { %v3329_v34 = vpop.f32.mrf.mxu1 }
 0x3da   : > { %v5264_v8 = vmax.f32 %v4835_v7, 0.0  ;;  %v4842_v20 = vadd.f32 %v3329_v34, %v4783_v18 }
 0x3db   : > { %v1580_v45 = vpop.f32.mrf.mxu1 }
 0x3dc   : > { %v4845_v48 = vadd.f32 %v4783_v18, %v1580_v45  ;;  %3404 = vmatprep.mubr.f32.mxu0 %v5264_v8  ;;  %v5265_v60 = vmax.f32 %v4842_v20, 0.0 }
 0x3dd   : > { %v3332_v11 = vpop.f32.mrf.mxu1  ;;  %3405 = vmatmul.mubr.f32.gmra.mxu0 %v5263_v41 }
 0x3de   : > { %v5266_v56 = vmax.f32 %v4845_v48, 0.0  ;;  %v4854_v63 = vadd.f32 %v3332_v11, %v4783_v18 }
 0x3df   : > { %v1590_v14 = vpop.f32.mrf.mxu1 }
 0x3e0   : > { %v4857_v33 = vadd.f32 %v4783_v18, %v1590_v14  ;;  %3407 = vmatprep.mubr.f32.mxu0 %v5266_v56  ;;  %v5269_v45 = vmax.f32 %v4854_v63, 0.0 }
 0x3e1   : > { %v3335_v36 = vpop.f32.mrf.mxu1  ;;  %3408 = vmatmul.mubr.f32.gmra.mxu0 %v5265_v60 }
 0x3e2   : > { %v5270_v34 = vmax.f32 %v4857_v33, 0.0  ;;  %v4866_v41 = vadd.f32 %v3335_v36, %v4783_v18 }
 0x3e3   : > { %v1600_v11 = vpop.f32.mrf.mxu1 }
 0x3e4   : > { %v4869_v8 = vadd.f32 %v4783_v18, %v1600_v11  ;;  %3410 = vmatprep.mubr.f32.mxu0 %v5270_v34  ;;  %v5273_v56 = vmax.f32 %v4866_v41, 0.0 }
 0x3e5   : > { %v3338_v14 = vpop.f32.mrf.mxu1  ;;  %3411 = vmatmul.mubr.f32.gmra.mxu0 %v5269_v45 }
 0x3e6   : > { %v5274_v60 = vmax.f32 %v4869_v8, 0.0  ;;  %v4878_v47 = vadd.f32 %v3338_v14, %v4783_v18 }
 0x3e7   : > { %v1610_v36 = vpop.f32.mrf.mxu1 }
 0x3e8   : > { %v4881_v59 = vadd.f32 %v4783_v18, %v1610_v36  ;;  %3413 = vmatprep.mubr.f32.mxu0 %v5274_v60  ;;  %v5277_v34 = vmax.f32 %v4878_v47, 0.0 }
 0x3e9   : > { %v3341_v11 = vpop.f32.mrf.mxu1  ;;  %3414 = vmatmul.mubr.f32.gmra.mxu0 %v5273_v56 }
 0x3ea   : > { %v5278_v45 = vmax.f32 %v4881_v59, 0.0  ;;  %v4890_v29 = vadd.f32 %v3341_v11, %v4783_v18 }
 0x3eb   : > { %v1620_v14 = vpop.f32.mrf.mxu1 }
 0x3ec   : > { %v4893_v61 = vadd.f32 %v4783_v18, %v1620_v14  ;;  %3416 = vmatprep.mubr.f32.mxu0 %v5278_v45  ;;  %v5281_v60 = vmax.f32 %v4890_v29, 0.0 }
 0x3ed   : > { %v3344_v36 = vpop.f32.mrf.mxu1  ;;  %3417 = vmatmul.mubr.f32.gmra.mxu0 %v5277_v34 }
 0x3ee   : > { %v5282_v56 = vmax.f32 %v4893_v61, 0.0  ;;  %v4902_v27 = vadd.f32 %v3344_v36, %v4783_v18 }
 0x3ef   : > { %v1630_v11 = vpop.f32.mrf.mxu1 }
 0x3f0   : > { %v4905_v57 = vadd.f32 %v4783_v18, %v1630_v11  ;;  %3419 = vmatprep.mubr.f32.mxu0 %v5282_v56  ;;  %v5285_v45 = vmax.f32 %v4902_v27, 0.0 }
 0x3f1   : > { %v3347_v14 = vpop.f32.mrf.mxu1  ;;  %3420 = vmatmul.mubr.f32.gmra.mxu0 %v5281_v60 }
 0x3f2   : > { %v5286_v34 = vmax.f32 %v4905_v57, 0.0  ;;  %v4914_v46 = vadd.f32 %v3347_v14, %v4783_v18 }
 0x3f3   : > { %v1640_v36 = vpop.f32.mrf.mxu1 }
 0x3f4   : > { %v4917_v50 = vadd.f32 %v4783_v18, %v1640_v36  ;;  %3422 = vmatprep.mubr.f32.mxu0 %v5286_v34  ;;  %v5289_v56 = vmax.f32 %v4914_v46, 0.0 }
 0x3f5   : > { %v3350_v11 = vpop.f32.mrf.mxu1  ;;  %3423 = vmatmul.mubr.f32.gmra.mxu0 %v5285_v45 }
 0x3f6   : > { %v5290_v60 = vmax.f32 %v4917_v50, 0.0  ;;  %v4926_v62 = vadd.f32 %v3350_v11, %v4783_v18 }
 0x3f7   : > { %v1650_v14 = vpop.f32.mrf.mxu1 }
 0x3f8   : > { %v4929_v58 = vadd.f32 %v4783_v18, %v1650_v14  ;;  %3425 = vmatprep.mubr.f32.mxu0 %v5290_v60  ;;  %v5293_v34 = vmax.f32 %v4926_v62, 0.0 }
 0x3f9   : > { %v3353_v36 = vpop.f32.mrf.mxu1  ;;  %3426 = vmatmul.mubr.f32.gmra.mxu0 %v5289_v56 }
 0x3fa   : > { %v5294_v45 = vmax.f32 %v4929_v58, 0.0  ;;  %v4938_v26 = vadd.f32 %v3353_v36, %v4783_v18 }
 0x3fb   : > { %v1660_v11 = vpop.f32.mrf.mxu1 }
 0x3fc   : > { %v4941_v22 = vadd.f32 %v4783_v18, %v1660_v11  ;;  %3428 = vmatprep.mubr.f32.mxu0 %v5294_v45  ;;  %v5297_v60 = vmax.f32 %v4938_v26, 0.0 }
 0x3fd   : > { %v3356_v14 = vpop.f32.mrf.mxu1  ;;  %3429 = vmatmul.mubr.f32.gmra.mxu0 %v5293_v34 }
 0x3fe   : > { %v5300_v56 = vmax.f32 %v4941_v22, 0.0  ;;  %v4950_v44 = vadd.f32 %v3356_v14, %v4783_v18 }
 0x3ff   : > { %v1670_v36 = vpop.f32.mrf.mxu1 }
 0x400   : > { %v4953_v5 = vadd.f32 %v4783_v18, %v1670_v36  ;;  %3431 = vmatprep.mubr.f32.mxu0 %v5300_v56  ;;  %v5298_v45 = vmax.f32 %v4950_v44, 0.0 }
 0x401   : > { %v3359_v11 = vpop.f32.mrf.mxu1  ;;  %3432 = vmatmul.mubr.f32.gmra.mxu0 %v5297_v60 }
 0x402   : > { %v5299_v34 = vmax.f32 %v4953_v5, 0.0  ;;  %v4962_v19 = vadd.f32 %v3359_v11, %v4783_v18  ;;  %v2037_v11 = vld [vmem:[#allocation8 + $0x88] sm:$0xff] }
 0x403   : > { %v1680_v14 = vpop.f32.mrf.mxu1  ;;  %3468 = vmatprep.subr.mxu1 %v2037_v11 }
 0x404   : > { %v4965_v21 = vadd.f32 %v4783_v18, %v1680_v14  ;;  %3434 = vmatprep.mubr.f32.mxu0 %v5299_v34  ;;  %v5304_v60 = vmax.f32 %v4962_v19, 0.0  ;;  %3469 = vmatpush3.msra.mxu1 %v2037_v11  ;;  %v2036_v18 = vld [vmem:[#allocation8 + $0x80] sm:$0xff] }
 0x405   : > { %3435 = vmatmul.mubr.f32.gmra.mxu0 %v5298_v45  ;;  %3470 = vmatprep.subr.mxu1 %v2036_v18  ;;  %v4980_v14 = vld [vmem:[%s5237_s4 + $0x1] ss:$0 sm:$0xff] }
 0x406   : > { %v5301_v36 = vmax.f32 %v4965_v21, 0.0  ;;  %3471 = vmatpush3.msra.mxu1 %v2036_v18 }
 0x408   : > { %3437 = vmatprep.mubr.f32.mxu0 %v5301_v36 }
 0x409   : > { %3438 = vmatmul.mubr.f32.gmra.mxu0 %v5304_v60 }
 0x48c   : > { %v3394_v45 = vpop.f32.mrf.mxu0 }
 0x48d   : > { %v1818_v34 = vadd.f32 %v3394_v45, %v4980_v14 }
 0x48e   : > { %v1812_v56 = vpop.f32.mrf.mxu0 }
 0x48f   : > { %v1813_v36 = vadd.f32 %v4980_v14, %v1812_v56  ;;  %v1972_v39 = vmax.f32 %v1818_v34, 0.0  ;;  %v5365_v34 = vmax.f32 %v4797_v24, 0.0 }
 0x490   : > { %v3397_v42 = vpop.f32.mrf.mxu0 }
 0x491   : > { %v1971_v60 = vmax.f32 %v1813_v36, 0.0  ;;  %v1828_v55 = vadd.f32 %v3397_v42, %v4980_v14  ;;  %v2004_v54 = vadd.f32 %v1972_v39, %v5364_v32  ;;  %v5368_v39 = vmax.f32 %v4806_v4, 0.0 }
 0x492   : > { %v1822_v11 = vpop.f32.mrf.mxu0 }
 0x493   : > { %v2003_v18 = vadd.f32 %v1971_v60, %v5363_v53  ;;  %v1823_v10 = vadd.f32 %v4980_v14, %v1822_v11  ;;  %v1974_v43 = vmax.f32 %v1828_v55, 0.0  ;;  %v5366_v53 = vmax.f32 %v4794_v51, 0.0 }
 0x494   : > { %v3400_v23 = vpop.f32.mrf.mxu0 }
 0x495   : > { %v1973_v45 = vmax.f32 %v1823_v10, 0.0  ;;  %v1838_v31 = vadd.f32 %v3400_v23, %v4980_v14  ;;  %3472 = vmatprep.mubr.f32.mxu1 %v2003_v18  ;;  %v2006_v16 = vadd.f32 %v1974_v43, %v5366_v53  ;;  %v5367_v23 = vmax.f32 %v4809_v9, 0.0 }
 0x496   : > { %v1832_v56 = vpop.f32.mrf.mxu0  ;;  %3473 = vmatmul.mubr.f32.vlgmr.msra.gmra.mxu1 %v2004_v54  ;;  %v5369_v43 = vmax.f32 %v4821_v2, 0.0 }
 0x497   : > { %v2005_v42 = vadd.f32 %v1973_v45, %v5365_v34  ;;  %v1833_v36 = vadd.f32 %v4980_v14, %v1832_v56  ;;  %v1976_v60 = vmax.f32 %v1838_v31, 0.0 }
 0x498   : > { %v3403_v11 = vpop.f32.mrf.mxu0 }
 0x499   : > { %v1975_v15 = vmax.f32 %v1833_v36, 0.0  ;;  %v1848_v32 = vadd.f32 %v3403_v11, %v4980_v14  ;;  %3475 = vmatprep.mubr.f32.mxu1 %v2005_v42  ;;  %v2008_v24 = vadd.f32 %v1976_v60, %v5368_v39  ;;  %v5370_v42 = vmax.f32 %v4818_v35, 0.0 }
 0x49a   : > { %v1842_v10 = vpop.f32.mrf.mxu0  ;;  %3476 = vmatmul.mubr.f32.gmra.mxu1 %v2006_v16 }
 0x49b   : > { %v2007_v55 = vadd.f32 %v1975_v15, %v5367_v23  ;;  %v1843_v54 = vadd.f32 %v4980_v14, %v1842_v10  ;;  %v1978_v18 = vmax.f32 %v1848_v32, 0.0  ;;  %v5371_v15 = vmax.f32 %v4835_v7, 0.0 }
 0x49c   : > { %v5372_v10 = vmax.f32 %v4830_v0, 0.0  ;;  %v5374_v7 = vmax.f32 %v4842_v20, 0.0 }
 0x49d   : > { %v1977_v45 = vmax.f32 %v1843_v54, 0.0  ;;  %v3406_v51 = vpop.f32.mrf.mxu0  ;;  %3478 = vmatprep.mubr.f32.mxu1 %v2007_v55  ;;  %v2010_v9 = vadd.f32 %v1978_v18, %v5370_v42  ;;  %v5373_v18 = vmax.f32 %v4845_v48, 0.0  ;;  %v5376_v48 = vmax.f32 %v4854_v63, 0.0 }
 0x49e   : > { %v1858_v31 = vadd.f32 %v3406_v51, %v4980_v14  ;;  %3479 = vmatmul.mubr.f32.gmra.mxu1 %v2008_v24 }
 0x49f   : > { %v2009_v56 = vadd.f32 %v1977_v45, %v5369_v43  ;;  %v1852_v34 = vpop.f32.mrf.mxu0 }
 0x4a0   : > { %v1853_v36 = vadd.f32 %v4980_v14, %v1852_v34  ;;  %v1980_v53 = vmax.f32 %v1858_v31, 0.0 }
 0x4a1   : > { %v3409_v16 = vpop.f32.mrf.mxu0  ;;  %3481 = vmatprep.mubr.f32.mxu1 %v2009_v56 }
 0x4a2   : > { %v1979_v4 = vmax.f32 %v1853_v36, 0.0  ;;  %v1868_v60 = vadd.f32 %v3409_v16, %v4980_v14  ;;  %3482 = vmatmul.mubr.f32.gmra.mxu1 %v2010_v9  ;;  %v2012_v23 = vadd.f32 %v1980_v53, %v5372_v10  ;;  %v5375_v9 = vmax.f32 %v4857_v33, 0.0 }
 0x4a3   : > { %v1862_v11 = vpop.f32.mrf.mxu0  ;;  %v5378_v33 = vmax.f32 %v4866_v41, 0.0 }
 0x4a4   : > { %v2011_v32 = vadd.f32 %v1979_v4, %v5371_v15  ;;  %v1863_v2 = vadd.f32 %v4980_v14, %v1862_v11  ;;  %v1982_v35 = vmax.f32 %v1868_v60, 0.0 }
 0x4a5   : > { %v3412_v55 = vpop.f32.mrf.mxu0 }
 0x4a6   : > { %v1981_v54 = vmax.f32 %v1863_v2, 0.0  ;;  %v1878_v39 = vadd.f32 %v3412_v55, %v4980_v14  ;;  %3484 = vmatprep.mubr.f32.mxu1 %v2011_v32  ;;  %v2014_v31 = vadd.f32 %v1982_v35, %v5374_v7  ;;  %v5377_v32 = vmax.f32 %v4869_v8, 0.0 }
 0x4a7   : > { %v1872_v24 = vpop.f32.mrf.mxu0  ;;  %3485 = vmatmul.mubr.f32.gmra.mxu1 %v2012_v23  ;;  %v5380_v8 = vmax.f32 %v4878_v47, 0.0 }
 0x4a8   : > { %v2013_v45 = vadd.f32 %v1981_v54, %v5373_v18  ;;  %v1873_v51 = vadd.f32 %v4980_v14, %v1872_v24  ;;  %v1984_v43 = vmax.f32 %v1878_v39, 0.0  ;;  %v5379_v24 = vmax.f32 %v4881_v59, 0.0 }
 0x4a9   : > { %v3415_v56 = vpop.f32.mrf.mxu0  ;;  %v5382_v59 = vmax.f32 %v4890_v29, 0.0 }
 0x4aa   : > { %v1983_v0 = vmax.f32 %v1873_v51, 0.0  ;;  %v1888_v34 = vadd.f32 %v3415_v56, %v4980_v14  ;;  %3487 = vmatprep.mubr.f32.mxu1 %v2013_v45  ;;  %v2016_v16 = vadd.f32 %v1984_v43, %v5376_v48 }
 0x4ab   : > { %v1882_v42 = vpop.f32.mrf.mxu0  ;;  %3488 = vmatmul.mubr.f32.gmra.mxu1 %v2014_v31 }
 0x4ac   : > { %v2015_v36 = vadd.f32 %v1983_v0, %v5375_v9  ;;  %v1883_v53 = vadd.f32 %v4980_v14, %v1882_v42  ;;  %v1986_v4 = vmax.f32 %v1888_v34, 0.0  ;;  %v5381_v0 = vmax.f32 %v4893_v61, 0.0 }
 0x4ad   : > { %v3418_v60 = vpop.f32.mrf.mxu0  ;;  %v5384_v61 = vmax.f32 %v4902_v27, 0.0 }
 0x4ae   : > { %v1985_v20 = vmax.f32 %v1883_v53, 0.0  ;;  %v1898_v11 = vadd.f32 %v3418_v60, %v4980_v14  ;;  %3490 = vmatprep.mubr.f32.mxu1 %v2015_v36  ;;  %v2018_v23 = vadd.f32 %v1986_v4, %v5378_v33  ;;  %v5383_v4 = vmax.f32 %v4905_v57, 0.0 }
 0x4af   : > { %v1892_v15 = vpop.f32.mrf.mxu0  ;;  %3491 = vmatmul.mubr.f32.gmra.mxu1 %v2016_v16  ;;  %v5385_v33 = vmax.f32 %v4917_v50, 0.0  ;;  %v5386_v57 = vmax.f32 %v4914_v46, 0.0  ;;  %v5388_v50 = vmax.f32 %v4926_v62, 0.0 }
 0x4b0   : > { %v2017_v2 = vadd.f32 %v1985_v20, %v5377_v32  ;;  %v1893_v10 = vadd.f32 %v4980_v14, %v1892_v15  ;;  %v1988_v35 = vmax.f32 %v1898_v11, 0.0 }
 0x4b1   : > { %v3421_v55 = vpop.f32.mrf.mxu0 }
 0x4b2   : > { %v1987_v63 = vmax.f32 %v1893_v10, 0.0  ;;  %v1908_v54 = vadd.f32 %v3421_v55, %v4980_v14  ;;  %3493 = vmatprep.mubr.f32.mxu1 %v2017_v2  ;;  %v2020_v51 = vadd.f32 %v1988_v35, %v5380_v8 }
 0x4b3   : > { %v1902_v39 = vpop.f32.mrf.mxu0  ;;  %3494 = vmatmul.mubr.f32.gmra.mxu1 %v2018_v23 }
 0x4b4   : > { %v2019_v18 = vadd.f32 %v1987_v63, %v5379_v24  ;;  %v1903_v45 = vadd.f32 %v4980_v14, %v1902_v39  ;;  %v1990_v7 = vmax.f32 %v1908_v54, 0.0 }
 0x4b5   : > { %v3424_v31 = vpop.f32.mrf.mxu0 }
 0x4b6   : > { %v1989_v41 = vmax.f32 %v1903_v45, 0.0  ;;  %v1918_v43 = vadd.f32 %v3424_v31, %v4980_v14  ;;  %3496 = vmatprep.mubr.f32.mxu1 %v2019_v18  ;;  %v2022_v9 = vadd.f32 %v1990_v7, %v5382_v59  ;;  %v5387_v18 = vmax.f32 %v4929_v58, 0.0 }
 0x4b7   : > { %v1912_v56 = vpop.f32.mrf.mxu0  ;;  %3497 = vmatmul.mubr.f32.gmra.mxu1 %v2020_v51  ;;  %v5390_v58 = vmax.f32 %v4938_v26, 0.0  ;;  %v5393_v26 = vmax.f32 %v4965_v21, 0.0 }
 0x4b8   : > { %v2021_v34 = vadd.f32 %v1989_v41, %v5381_v0  ;;  %v1913_v42 = vadd.f32 %v4980_v14, %v1912_v56  ;;  %v1992_v36 = vmax.f32 %v1918_v43, 0.0  ;;  %v5389_v56 = vmax.f32 %v4941_v22, 0.0 }
 0x4b9   : > { %v3427_v53 = vpop.f32.mrf.mxu0  ;;  %v5392_v22 = vmax.f32 %v4950_v44, 0.0 }
 0x4ba   : > { %v1991_v47 = vmax.f32 %v1913_v42, 0.0  ;;  %v1928_v48 = vadd.f32 %v3427_v53, %v4980_v14  ;;  %3499 = vmatprep.mubr.f32.mxu1 %v2021_v34  ;;  %v2024_v11 = vadd.f32 %v1992_v36, %v5384_v61 }
 0x4bb   : > { %v1922_v16 = vpop.f32.mrf.mxu0  ;;  %3500 = vmatmul.mubr.f32.gmra.mxu1 %v2022_v9 }
 0x4bc   : > { %v2023_v60 = vadd.f32 %v1991_v47, %v5383_v4  ;;  %v1923_v20 = vadd.f32 %v4980_v14, %v1922_v16  ;;  %v1994_v15 = vmax.f32 %v1928_v48, 0.0  ;;  %v5391_v47 = vmax.f32 %v4953_v5, 0.0  ;;  %v5081_v5 = vld [vmem:[%s5239_s6 + $0x1] ss:$0 sm:$0xff] }
 0x4bd   : > { %v3430_v32 = vpop.f32.mrf.mxu0 }
 0x4be   : > { %v1993_v29 = vmax.f32 %v1923_v20, 0.0  ;;  %v1938_v2 = vadd.f32 %v3430_v32, %v4980_v14  ;;  %3502 = vmatprep.mubr.f32.mxu1 %v2023_v60  ;;  %v2026_v55 = vadd.f32 %v1994_v15, %v5386_v57 }
 0x4bf   : > { %v1932_v10 = vpop.f32.mrf.mxu0  ;;  %3503 = vmatmul.mubr.f32.gmra.mxu1 %v2024_v11  ;;  %v5394_v11 = vmax.f32 %v4962_v19, 0.0 }
 0x4c0   : > { %v2025_v23 = vadd.f32 %v1993_v29, %v5385_v33  ;;  %v1933_v35 = vadd.f32 %v4980_v14, %v1932_v10  ;;  %v1996_v63 = vmax.f32 %v1938_v2, 0.0 }
 0x4c1   : > { %v3433_v54 = vpop.f32.mrf.mxu0 }
 0x4c2   : > { %v1995_v27 = vmax.f32 %v1933_v35, 0.0  ;;  %v1948_v39 = vadd.f32 %v3433_v54, %v4980_v14  ;;  %3505 = vmatprep.mubr.f32.mxu1 %v2025_v23  ;;  %v2028_v51 = vadd.f32 %v1996_v63, %v5388_v50 }
 0x4c3   : > { %v1942_v24 = vpop.f32.mrf.mxu0  ;;  %3506 = vmatmul.mubr.f32.gmra.mxu1 %v2026_v55 }
 0x4c4   : > { %v2027_v45 = vadd.f32 %v1995_v27, %v5387_v18  ;;  %v1943_v8 = vadd.f32 %v4980_v14, %v1942_v24  ;;  %v1998_v7 = vmax.f32 %v1948_v39, 0.0 }
 0x4c5   : > { %v3436_v31 = vpop.f32.mrf.mxu0 }
 0x4c6   : > { %v1997_v46 = vmax.f32 %v1943_v8, 0.0  ;;  %v1958_v41 = vadd.f32 %v3436_v31, %v4980_v14  ;;  %3508 = vmatprep.mubr.f32.mxu1 %v2027_v45  ;;  %v2030_v42 = vadd.f32 %v1998_v7, %v5390_v58 }
 0x4c7   : > { %v1952_v43 = vpop.f32.mrf.mxu0  ;;  %3509 = vmatmul.mubr.f32.gmra.mxu1 %v2028_v51 }
 0x4c8   : > { %v2029_v0 = vadd.f32 %v1997_v46, %v5389_v56  ;;  %v1953_v34 = vadd.f32 %v4980_v14, %v1952_v43  ;;  %v2000_v59 = vmax.f32 %v1958_v41, 0.0 }
 0x4c9   : > { %v3439_v9 = vpop.f32.mrf.mxu0 }
 0x4ca   : > { %v1999_v62 = vmax.f32 %v1953_v34, 0.0  ;;  %v1968_v36 = vadd.f32 %v3439_v9, %v4980_v14  ;;  %3511 = vmatprep.mubr.f32.mxu1 %v2029_v0  ;;  %v2032_v4 = vadd.f32 %v2000_v59, %v5392_v22 }
 0x4cb   : > { %v1962_v53 = vpop.f32.mrf.mxu0  ;;  %3512 = vmatmul.mubr.f32.gmra.mxu1 %v2030_v42 }
 0x4cc   : > { %v2031_v48 = vadd.f32 %v1999_v62, %v5391_v47  ;;  %v1963_v16 = vadd.f32 %v4980_v14, %v1962_v53  ;;  %v2002_v60 = vmax.f32 %v1968_v36, 0.0 }
 0x4ce   : > { %v2001_v20 = vmax.f32 %v1963_v16, 0.0  ;;  %3514 = vmatprep.mubr.f32.mxu1 %v2031_v48  ;;  %v2034_v15 = vadd.f32 %v2002_v60, %v5394_v11 }
 0x4cf   : > { %3515 = vmatmul.mubr.f32.gmra.mxu1 %v2032_v4 }
 0x4d0   : > { %v2033_v61 = vadd.f32 %v2001_v20, %v5393_v26 }
 0x4d2   : > { %3517 = vmatprep.mubr.f32.mxu1 %v2033_v61 }
 0x4d3   : > { %3518 = vmatmul.mubr.f32.gmra.mxu1 %v2034_v15 }
 0x556   : > { %v3474_v14 = vpop.f32.mrf.mxu1 }
 0x557   : > { %v2132_v44 = vadd.f32 %v3474_v14, %v5081_v5 }
 0x558   : > { %v2126_v32 = vpop.f32.mrf.mxu1 }
 0x559   : > { %v2714_v29 = vmul.f32 -1.442695, %v2132_v44  ;;  %v2127_v2 = vadd.f32 %v5081_v5, %v2126_v32 }
 0x55a   : > { %v3477_v10 = vpop.f32.mrf.mxu1 }
 0x55b   : > { %3729 = vpow2.f32 %v2714_v29  ;;  %v2713_v21 = vmul.f32 -1.442695, %v2127_v2  ;;  %v2142_v19 = vadd.f32 %v3477_v10, %v5081_v5 }
 0x55c   : > { %v2136_v33 = vpop.f32.mrf.mxu1 }
 0x55d   : > { %3731 = vpow2.f32 %v2713_v21  ;;  %v2716_v23 = vmul.f32 -1.442695, %v2142_v19  ;;  %v2137_v35 = vadd.f32 %v5081_v5, %v2136_v33 }
 0x55e   : > { %v3480_v57 = vpop.f32.mrf.mxu1 }
 0x55f   : > { %3733 = vpow2.f32 %v2716_v23  ;;  %v2715_v55 = vmul.f32 -1.442695, %v2137_v35  ;;  %v2152_v63 = vadd.f32 %v3480_v57, %v5081_v5 }
 0x560   : > { %v2146_v54 = vpop.f32.mrf.mxu1 }
 0x561   : > { %3735 = vpow2.f32 %v2715_v55  ;;  %v2718_v27 = vmul.f32 -1.442695, %v2152_v63  ;;  %v2147_v39 = vadd.f32 %v5081_v5, %v2146_v54 }
 0x562   : > { %v3483_v24 = vpop.f32.mrf.mxu1 }
 0x563   : > { %3737 = vpow2.f32 %v2718_v27  ;;  %v2717_v18 = vmul.f32 -1.442695, %v2147_v39  ;;  %v2162_v45 = vadd.f32 %v3483_v24, %v5081_v5 }
 0x564   : > { %v2156_v8 = vpop.f32.mrf.mxu1 }
 0x565   : > { %3739 = vpow2.f32 %v2717_v18  ;;  %v2720_v50 = vmul.f32 -1.442695, %v2162_v45  ;;  %v2157_v51 = vadd.f32 %v5081_v5, %v2156_v8 }
 0x567   : > { %3741 = vpow2.f32 %v2720_v50  ;;  %v2719_v7 = vmul.f32 -1.442695, %v2157_v51  ;;  %v3486_v31 = vpop.f32.mrf.mxu1 }
 0x568   : > { %v3730_v46 = vpop.eup %3729  ;;  %v2172_v41 = vadd.f32 %v3486_v31, %v5081_v5 }
 0x569   : > { %v2382_v43 = vadd.f32 1.0, %v3730_v46  ;;  %3743 = vpow2.f32 %v2719_v7  ;;  %v2166_v56 = vpop.f32.mrf.mxu1 }
 0x56a   : > { %v3732_v0 = vpop.eup %3731  ;;  %v2722_v34 = vmul.f32 -1.442695, %v2172_v41  ;;  %v2167_v58 = vadd.f32 %v5081_v5, %v2166_v56 }
 0x56b   : > { %3745 = vrcp.f32 %v2382_v43  ;;  %v2381_v42 = vadd.f32 1.0, %v3732_v0  ;;  %v3489_v59 = vpop.f32.mrf.mxu1 }
 0x56c   : > { %v3734_v9 = vpop.eup %3733  ;;  %3747 = vpow2.f32 %v2722_v34  ;;  %v2721_v62 = vmul.f32 -1.442695, %v2167_v58  ;;  %v2182_v36 = vadd.f32 %v3489_v59, %v5081_v5 }
 0x56d   : > { %3749 = vrcp.f32 %v2381_v42  ;;  %v2384_v53 = vadd.f32 1.0, %v3734_v9  ;;  %v2176_v47 = vpop.f32.mrf.mxu1 }
 0x56e   : > { %v3736_v48 = vpop.eup %3735  ;;  %3751 = vpow2.f32 %v2721_v62  ;;  %v2724_v16 = vmul.f32 -1.442695, %v2182_v36  ;;  %v2177_v22 = vadd.f32 %v5081_v5, %v2176_v47 }
 0x56f   : > { %3753 = vrcp.f32 %v2384_v53  ;;  %v2383_v4 = vadd.f32 1.0, %v3736_v48  ;;  %v3492_v60 = vpop.f32.mrf.mxu1 }
 0x570   : > { %v3738_v20 = vpop.eup %3737  ;;  %3755 = vpow2.f32 %v2724_v16  ;;  %v2723_v26 = vmul.f32 -1.442695, %v2177_v22  ;;  %v2192_v61 = vadd.f32 %v3492_v60, %v5081_v5 }
 0x571   : > { %3757 = vrcp.f32 %v2383_v4  ;;  %v2386_v11 = vadd.f32 1.0, %v3738_v20  ;;  %v2186_v15 = vpop.f32.mrf.mxu1 }
 0x572   : > { %v3740_v14 = vpop.eup %3739  ;;  %3759 = vpow2.f32 %v2723_v26  ;;  %v2726_v44 = vmul.f32 -1.442695, %v2192_v61  ;;  %v2187_v32 = vadd.f32 %v5081_v5, %v2186_v15 }
 0x573   : > { %3761 = vrcp.f32 %v2386_v11  ;;  %v2385_v29 = vadd.f32 1.0, %v3740_v14  ;;  %v3495_v2 = vpop.f32.mrf.mxu1 }
 0x574   : > { %v3742_v10 = vpop.eup %3741  ;;  %3763 = vpow2.f32 %v2726_v44  ;;  %v2725_v21 = vmul.f32 -1.442695, %v2187_v32  ;;  %v2202_v19 = vadd.f32 %v3495_v2, %v5081_v5 }
 0x575   : > { %3765 = vrcp.f32 %v2385_v29  ;;  %v2388_v33 = vadd.f32 1.0, %v3742_v10  ;;  %v2196_v23 = vpop.f32.mrf.mxu1 }
 0x576   : > { %v3744_v35 = vpop.eup %3743  ;;  %3767 = vpow2.f32 %v2725_v21  ;;  %v2728_v57 = vmul.f32 -1.442695, %v2202_v19  ;;  %v2197_v55 = vadd.f32 %v5081_v5, %v2196_v23 }
 0x577   : > { %3769 = vrcp.f32 %v2388_v33  ;;  %v2387_v63 = vadd.f32 1.0, %v3744_v35  ;;  %v3498_v54 = vpop.f32.mrf.mxu1 }
 0x578   : > { %v3746_v27 = vpop.eup %3745  ;;  %3771 = vpow2.f32 %v2728_v57  ;;  %v2727_v39 = vmul.f32 -1.442695, %v2197_v55  ;;  %v2212_v24 = vadd.f32 %v3498_v54, %v5081_v5 }
 0x579   : > { %v3748_v18 = vpop.eup %3747  ;;  %v2478_v45 = vadd.f32 %v3746_v27, %v4643_v52  ;;  %3773 = vrcp.f32 %v2387_v63  ;;  %v2206_v8 = vpop.f32.mrf.mxu1 }
 0x57a   : > { %v3750_v50 = vpop.eup %3749  ;;  %v2390_v51 = vadd.f32 1.0, %v3748_v18  ;;  %3775 = vpow2.f32 %v2727_v39  ;;  %v2730_v7 = vmul.f32 -1.442695, %v2212_v24  ;;  %v2207_v31 = vadd.f32 %v5081_v5, %v2206_v8 }
 0x57b   : > { %v3752_v46 = vpop.eup %3751  ;;  %2510 = vst [vmem:[%s5104_s12 + $0x8] sm:$0xff] %v2478_v45  ;;  %v2477_v41 = vadd.f32 %v3750_v50, %v4640_v25  ;;  %v3501_v43 = vpop.f32.mrf.mxu1 }
 0x57c   : > { %v3754_v56 = vpop.eup %3753  ;;  %3777 = vrcp.f32 %v2390_v51  ;;  %v2389_v52 = vadd.f32 1.0, %v3752_v46  ;;  %v2729_v0 = vmul.f32 -1.442695, %v2207_v31  ;;  %v2222_v34 = vadd.f32 %v3501_v43, %v5081_v5 }
 0x57d   : > { %v3756_v58 = vpop.eup %3755  ;;  %2509 = vst [vmem:[%s5104_s12] sm:$0xff] %v2477_v41  ;;  %v2480_v42 = vadd.f32 %v3754_v56, %v4653_v30  ;;  %3779 = vpow2.f32 %v2730_v7  ;;  %v2216_v59 = vpop.f32.mrf.mxu1 }
 0x57e   : > { %v3758_v9 = vpop.eup %3757  ;;  %3781 = vrcp.f32 %v2389_v52  ;;  %v2392_v62 = vadd.f32 1.0, %v3756_v58  ;;  %v2732_v36 = vmul.f32 -1.442695, %v2222_v34  ;;  %v2217_v25 = vadd.f32 %v5081_v5, %v2216_v59 }
 0x57f   : > { %v3760_v53 = vpop.eup %3759  ;;  %2512 = vst [vmem:[%s5104_s12 + $0x18] sm:$0xff] %v2480_v42  ;;  %v2479_v47 = vadd.f32 %v3758_v9, %v4650_v3  ;;  %3783 = vpow2.f32 %v2729_v0  ;;  %v3504_v48 = vpop.f32.mrf.mxu1 }
 0x580   : > { %v3762_v16 = vpop.eup %3761  ;;  %3785 = vrcp.f32 %v2392_v62  ;;  %v2391_v22 = vadd.f32 1.0, %v3760_v53  ;;  %v2731_v30 = vmul.f32 -1.442695, %v2217_v25  ;;  %v2232_v4 = vadd.f32 %v3504_v48, %v5081_v5 }
 0x581   : > { %v3764_v60 = vpop.eup %3763  ;;  %2511 = vst [vmem:[%s5104_s12 + $0x10] sm:$0xff] %v2479_v47  ;;  %v2482_v20 = vadd.f32 %v3762_v16, %v4663_v38  ;;  %3787 = vpow2.f32 %v2732_v36  ;;  %v2226_v26 = vpop.f32.mrf.mxu1 }
 0x582   : > { %v3766_v61 = vpop.eup %3765  ;;  %3789 = vrcp.f32 %v2391_v22  ;;  %v2394_v11 = vadd.f32 1.0, %v3764_v60  ;;  %v2734_v3 = vmul.f32 -1.442695, %v2232_v4  ;;  %v2227_v15 = vadd.f32 %v5081_v5, %v2226_v26 }
 0x583   : > { %v3768_v14 = vpop.eup %3767  ;;  %2514 = vst [vmem:[%s5104_s12 + $0x28] sm:$0xff] %v2482_v20  ;;  %v2481_v44 = vadd.f32 %v3766_v61, %v4660_v13  ;;  %3791 = vpow2.f32 %v2731_v30  ;;  %v3507_v32 = vpop.f32.mrf.mxu1 }
 0x584   : > { %v3770_v29 = vpop.eup %3769  ;;  %3793 = vrcp.f32 %v2394_v11  ;;  %v2393_v2 = vadd.f32 1.0, %v3768_v14  ;;  %v2733_v38 = vmul.f32 -1.442695, %v2227_v15  ;;  %v2242_v10 = vadd.f32 %v3507_v32, %v5081_v5 }
 0x585   : > { %v3772_v21 = vpop.eup %3771  ;;  %2513 = vst [vmem:[%s5104_s12 + $0x20] sm:$0xff] %v2481_v44  ;;  %v2484_v19 = vadd.f32 %v3770_v29, %v4673_v12  ;;  %3795 = vpow2.f32 %v2734_v3  ;;  %v2236_v33 = vpop.f32.mrf.mxu1  ;;  %v5395_v29 = vld [vmem:[#allocation16_spill] sm:$0xff] }
 0x586   : > { %v3774_v23 = vpop.eup %3773  ;;  %3797 = vrcp.f32 %v2393_v2  ;;  %v2396_v35 = vadd.f32 1.0, %v3772_v21  ;;  %v2736_v13 = vmul.f32 -1.442695, %v2242_v10  ;;  %v2237_v57 = vadd.f32 %v5081_v5, %v2236_v33  ;;  %v5396_v33 = vld [vmem:[#allocation15_spill] sm:$0xff] }
 0x587   : > { %v3776_v55 = vpop.eup %3775  ;;  %2516 = vst [vmem:[%s5104_s12 + $0x38] sm:$0xff] %v2484_v19  ;;  %v2483_v63 = vadd.f32 %v3774_v23, %v4670_v40  ;;  %3799 = vpow2.f32 %v2733_v38  ;;  %v3510_v54 = vpop.f32.mrf.mxu1 }
 0x588   : > { %3801 = vrcp.f32 %v2396_v35  ;;  %v2395_v27 = vadd.f32 1.0, %v3776_v55  ;;  %v2735_v39 = vmul.f32 -1.442695, %v2237_v57  ;;  %v2252_v12 = vadd.f32 %v3510_v54, %v5081_v5 }
 0x589   : > { %v3778_v24 = vpop.eup %3777  ;;  %2515 = vst [vmem:[%s5104_s12 + $0x30] sm:$0xff] %v2483_v63  ;;  %3803 = vpow2.f32 %v2736_v13  ;;  %v2246_v18 = vpop.f32.mrf.mxu1 }
 0x58a   : > { %v3780_v45 = vpop.eup %3779  ;;  %v2486_v8 = vadd.f32 %v3778_v24, %v4683_v1  ;;  %3805 = vrcp.f32 %v2395_v27  ;;  %v2738_v50 = vmul.f32 -1.442695, %v2252_v12  ;;  %v2247_v51 = vadd.f32 %v5081_v5, %v2246_v18  ;;  %v5398_v18 = vld [vmem:[#allocation17_spill] sm:$0xff] }
 0x58b   : > { %v3782_v40 = vpop.eup %3781  ;;  %v2398_v7 = vadd.f32 1.0, %v3780_v45  ;;  %3807 = vpow2.f32 %v2735_v39  ;;  %v3513_v31 = vpop.f32.mrf.mxu1 }
 0x58c   : > { %v3784_v46 = vpop.eup %3783  ;;  %2518 = vst [vmem:[%s5104_s12 + $0x48] sm:$0xff] %v2486_v8  ;;  %v2485_v41 = vadd.f32 %v3782_v40, %v4680_v49  ;;  %3809 = vpow2.f32 %v2738_v50  ;;  %v2737_v43 = vmul.f32 -1.442695, %v2247_v51  ;;  %v2262_v56 = vadd.f32 %v3513_v31, %v5081_v5  ;;  %v5399_v40 = vld [vmem:[#allocation20_spill] sm:$0xff] }
 0x58d   : > { %v3786_v52 = vpop.eup %3785  ;;  %3811 = vrcp.f32 %v2398_v7  ;;  %v2397_v1 = vadd.f32 1.0, %v3784_v46  ;;  %v2256_v0 = vpop.f32.mrf.mxu1 }
 0x58e   : > { %v3788_v34 = vpop.eup %3787  ;;  %2517 = vst [vmem:[%s5104_s12 + $0x40] sm:$0xff] %v2485_v41  ;;  %v2488_v58 = vadd.f32 %v3786_v52, %v4693_v17  ;;  %3813 = vpow2.f32 %v2737_v43  ;;  %v2740_v42 = vmul.f32 -1.442695, %v2262_v56  ;;  %v2257_v59 = vadd.f32 %v5081_v5, %v2256_v0  ;;  %v5400_v43 = vld [vmem:[#allocation19_spill] sm:$0xff] }
 0x58f   : > { %v3790_v9 = vpop.eup %3789  ;;  %3815 = vrcp.f32 %v2397_v1  ;;  %v2400_v49 = vadd.f32 1.0, %v3788_v34  ;;  %v3516_v62 = vpop.f32.mrf.mxu1  ;;  %v5401_v34 = vld [vmem:[#allocation22_spill] sm:$0xff] }
 0x590   : > { %v3792_v36 = vpop.eup %3791  ;;  %2520 = vst [vmem:[%s5104_s12 + $0x58] sm:$0xff] %v2488_v58  ;;  %v2487_v25 = vadd.f32 %v3790_v9, %v4690_v28  ;;  %3817 = vpow2.f32 %v2740_v42  ;;  %v2739_v53 = vmul.f32 -1.442695, %v2257_v59  ;;  %v2272_v47 = vadd.f32 %v3516_v62, %v5081_v5 }
 0x591   : > { %v3794_v48 = vpop.eup %3793  ;;  %3819 = vrcp.f32 %v2400_v49  ;;  %v2399_v17 = vadd.f32 1.0, %v3792_v36  ;;  %v2266_v16 = vpop.f32.mrf.mxu1  ;;  %v5402_v49 = vld [vmem:[#allocation21_spill] sm:$0xff] }
 0x592   : > { %v3796_v22 = vpop.eup %3795  ;;  %2519 = vst [vmem:[%s5104_s12 + $0x50] sm:$0xff] %v2487_v25  ;;  %v2490_v30 = vadd.f32 %v3794_v48, %v4703_v6  ;;  %3821 = vpow2.f32 %v2739_v53  ;;  %v2742_v4 = vmul.f32 -1.442695, %v2272_v47  ;;  %v2267_v60 = vadd.f32 %v5081_v5, %v2266_v16  ;;  %v5403_v47 = vld [vmem:[#allocation24_spill] sm:$0xff] }
 0x593   : > { %v3798_v20 = vpop.eup %3797  ;;  %3823 = vrcp.f32 %v2399_v17  ;;  %v2402_v28 = vadd.f32 1.0, %v3796_v22  ;;  %v3519_v26 = vpop.f32.mrf.mxu1 }
 0x594   : > { %v3800_v61 = vpop.eup %3799  ;;  %2522 = vst [vmem:[%s5104_s12 + $0x68] sm:$0xff] %v2490_v30  ;;  %v2489_v11 = vadd.f32 %v3798_v20, %v4700_v37  ;;  %3825 = vpow2.f32 %v2742_v4  ;;  %v2741_v3 = vmul.f32 -1.442695, %v2267_v60  ;;  %v2282_v15 = vadd.f32 %v3519_v26, %v5081_v5  ;;  %v5404_v30 = vld [vmem:[#allocation23_spill] sm:$0xff]  ;;  %v5405_v60 = vld [vmem:[#allocation26_spill] sm:$0xff]  ;;  %v5406_v26 = vld [vmem:[#allocation25_spill] sm:$0xff] }
 0x595   : > { %v3802_v14 = vpop.eup %3801  ;;  %3827 = vrcp.f32 %v2402_v28  ;;  %v2401_v6 = vadd.f32 1.0, %v3800_v61  ;;  %v2276_v44 = vpop.f32.mrf.mxu1 }
 0x596   : > { %v3804_v32 = vpop.eup %3803  ;;  %2521 = vst [vmem:[%s5104_s12 + $0x60] sm:$0xff] %v2489_v11  ;;  %v2492_v2 = vadd.f32 %v3802_v14, %v5395_v29  ;;  %3829 = vpow2.f32 %v2741_v3  ;;  %v2744_v38 = vmul.f32 -1.442695, %v2282_v15  ;;  %v2277_v10 = vadd.f32 %v5081_v5, %v2276_v44  ;;  %v5397_v5 = vld [vmem:[#allocation18_spill] sm:$0xff]  ;;  %v5407_v3 = vld [vmem:[#allocation28_spill] sm:$0xff] }
 0x597   : > { %v3806_v21 = vpop.eup %3805  ;;  %3831 = vrcp.f32 %v2401_v6  ;;  %v2404_v37 = vadd.f32 1.0, %v3804_v32  ;;  %v5408_v6 = vld [vmem:[#allocation27_spill] sm:$0xff]  ;;  %v5409_v29 = vld [vmem:[#allocation30_spill] sm:$0xff] }
 0x598   : > { %v3808_v19 = vpop.eup %3807  ;;  %2524 = vst [vmem:[%s5104_s12 + $0x78] sm:$0xff] %v2492_v2  ;;  %v2491_v23 = vadd.f32 %v3806_v21, %v5396_v33  ;;  %3833 = vpow2.f32 %v2744_v38  ;;  %v2743_v35 = vmul.f32 -1.442695, %v2277_v10  ;;  %v5410_v10 = vld [vmem:[#allocation29_spill] sm:$0xff] }
 0x599   : > { %v3810_v13 = vpop.eup %3809  ;;  %3835 = vrcp.f32 %v2404_v37  ;;  %v2403_v57 = vadd.f32 1.0, %v3808_v19  ;;  %v5411_v19 = vld [vmem:[#allocation32_spill] sm:$0xff] }
 0x59a   : > { %v3812_v55 = vpop.eup %3811  ;;  %2523 = vst [vmem:[%s5104_s12 + $0x70] sm:$0xff] %v2491_v23  ;;  %v2406_v63 = vadd.f32 1.0, %v3810_v13  ;;  %3837 = vpow2.f32 %v2743_v35  ;;  %v5412_v35 = vld [vmem:[#allocation31_spill] sm:$0xff] }
 0x59b   : > { %v3814_v54 = vpop.eup %3813  ;;  %v2494_v27 = vadd.f32 %v3812_v55, %v5397_v5  ;;  %3839 = vrcp.f32 %v2403_v57 }
 0x59c   : > { %v3816_v39 = vpop.eup %3815  ;;  %3841 = vrcp.f32 %v2406_v63  ;;  %v2405_v12 = vadd.f32 1.0, %v3814_v54 }
 0x59d   : > { %v3818_v24 = vpop.eup %3817  ;;  %2526 = vst [vmem:[%s5104_s12 + $0x88] sm:$0xff] %v2494_v27  ;;  %v2493_v45 = vadd.f32 %v3816_v39, %v5398_v18 }
 0x59e   : > { %v3820_v8 = vpop.eup %3819  ;;  %3843 = vrcp.f32 %v2405_v12  ;;  %v2408_v50 = vadd.f32 1.0, %v3818_v24 }
 0x59f   : > { %v3822_v51 = vpop.eup %3821  ;;  %2525 = vst [vmem:[%s5104_s12 + $0x80] sm:$0xff] %v2493_v45  ;;  %v2496_v7 = vadd.f32 %v3820_v8, %v5399_v40 }
 0x5a0   : > { %v3824_v31 = vpop.eup %3823  ;;  %3845 = vrcp.f32 %v2408_v50  ;;  %v2407_v46 = vadd.f32 1.0, %v3822_v51 }
 0x5a1   : > { %v3826_v41 = vpop.eup %3825  ;;  %2528 = vst [vmem:[%s5104_s12 + $0x98] sm:$0xff] %v2496_v7  ;;  %v2495_v56 = vadd.f32 %v3824_v31, %v5400_v43 }
 0x5a2   : > { %v3828_v52 = vpop.eup %3827  ;;  %3847 = vrcp.f32 %v2407_v46  ;;  %v2410_v1 = vadd.f32 1.0, %v3826_v41 }
 0x5a3   : > { %v3830_v0 = vpop.eup %3829  ;;  %2527 = vst [vmem:[%s5104_s12 + $0x90] sm:$0xff] %v2495_v56  ;;  %v2498_v58 = vadd.f32 %v3828_v52, %v5401_v34 }
 0x5a4   : > { %v3832_v42 = vpop.eup %3831  ;;  %3849 = vrcp.f32 %v2410_v1  ;;  %v2409_v59 = vadd.f32 1.0, %v3830_v0 }
 0x5a5   : > { %v3834_v9 = vpop.eup %3833  ;;  %2530 = vst [vmem:[%s5104_s12 + $0xa8] sm:$0xff] %v2498_v58  ;;  %v2497_v62 = vadd.f32 %v3832_v42, %v5402_v49 }
 0x5a6   : > { %v3836_v36 = vpop.eup %3835  ;;  %3851 = vrcp.f32 %v2409_v59  ;;  %v2412_v25 = vadd.f32 1.0, %v3834_v9 }
 0x5a7   : > { %v3838_v53 = vpop.eup %3837  ;;  %2529 = vst [vmem:[%s5104_s12 + $0xa0] sm:$0xff] %v2497_v62  ;;  %v2500_v48 = vadd.f32 %v3836_v36, %v5403_v47 }
 0x5a8   : > { %v3840_v17 = vpop.eup %3839  ;;  %3853 = vrcp.f32 %v2412_v25  ;;  %v2411_v16 = vadd.f32 1.0, %v3838_v53 }
 0x5a9   : > { %v3842_v22 = vpop.eup %3841  ;;  %2532 = vst [vmem:[%s5104_s12 + $0xb8] sm:$0xff] %v2500_v48  ;;  %v2499_v4 = vadd.f32 %v3840_v17, %v5404_v30 }
 0x5aa   : > { %v2502_v20 = vadd.f32 %v3842_v22, %v5405_v60  ;;  %3855 = vrcp.f32 %v2411_v16 }
 0x5ab   : > { %v3844_v28 = vpop.eup %3843  ;;  %2531 = vst [vmem:[%s5104_s12 + $0xb0] sm:$0xff] %v2499_v4 }
 0x5ac   : > { %2534 = vst [vmem:[%s5104_s12 + $0xc8] sm:$0xff] %v2502_v20  ;;  %v2501_v61 = vadd.f32 %v3844_v28, %v5406_v26 }
 0x5ad   : > { %v3846_v11 = vpop.eup %3845 }
 0x5ae   : > { %2533 = vst [vmem:[%s5104_s12 + $0xc0] sm:$0xff] %v2501_v61  ;;  %v2504_v15 = vadd.f32 %v3846_v11, %v5407_v3 }
 0x5af   : > { %v3848_v14 = vpop.eup %3847 }
 0x5b0   : > { %2536 = vst [vmem:[%s5104_s12 + $0xd8] sm:$0xff] %v2504_v15  ;;  %v2503_v44 = vadd.f32 %v3848_v14, %v5408_v6 }
 0x5b1   : > { %v3850_v32 = vpop.eup %3849 }
 0x5b2   : > { %2535 = vst [vmem:[%s5104_s12 + $0xd0] sm:$0xff] %v2503_v44  ;;  %v2506_v2 = vadd.f32 %v3850_v32, %v5409_v29 }
 0x5b3   : > { %v3852_v38 = vpop.eup %3851 }
 0x5b4   : > { %2538 = vst [vmem:[%s5104_s12 + $0xe8] sm:$0xff] %v2506_v2  ;;  %v2505_v21 = vadd.f32 %v3852_v38, %v5410_v10 }
 0x5b5   : > { %v3854_v37 = vpop.eup %3853 }
 0x5b6   : > { %2537 = vst [vmem:[%s5104_s12 + $0xe0] sm:$0xff] %v2505_v21  ;;  %v2508_v33 = vadd.f32 %v3854_v37, %v5411_v19 }
 0x5b7   : > { %v3856_v23 = vpop.eup %3855 }
 0x5b8   : > { %2540 = vst [vmem:[%s5104_s12 + $0xf8] sm:$0xff] %v2508_v33  ;;  %v2507_v13 = vadd.f32 %v3856_v23, %v5412_v35 }
 0x5ba   : > { %2539 = vst [vmem:[%s5104_s12 + $0xf0] sm:$0xff] %v2507_v13 }
 0x5bb   : > { %4008 = shalt.err (!%p4005_p10)
}
 0x5bc   : > { %s4009_s22 = scalar_lea.hbm %s5185_s13, 4096  ;;  %s4013_s16 = scalar_lea.hbm %s5240_s7, 8192 }
 0x5bd   : > { %p4010_p6 = scmp.ne.s32.totalorder %s5185_s13, %s4009_s22  ;;  %p4014_p3 = scmp.lt.s32.totalorder %s5185_s13, %s5240_s7 }
 0x5be   : > { %p4015_p11 = scmp.lt.s32.totalorder %s4013_s16, %s4009_s22 }
 0x5bf   : > { %p4011_p4 = pnand %p4010_p6, %p5413_p1 }
 0x5c0   : > { %p4016_p5 = por %p4015_p11, %p4014_p3 }
 0x5c1   : > { %p4012_p8 = pneg %p4011_p4 }
 0x5c3   : > { %p4017_p7 = pnand %p4016_p5, %p4012_p8 }
 0x5c5   : > { %4020 = shalt.err (!%p4017_p7)
}
 0x5c6   : > { %s4076_s9 = smov 128   ;;  %s4077_s10 = smov 8  }
 0x5c7   : > { %3534 = dma.vmem_to_hbm [thread:$0]  (%p5413_p1), %s5187_s30, 4096, %s5185_s13, %s2542_s28, %s4076_s9, %s4076_s9, %s4077_s10  }
 0x5c8 PF: > { %s2570_s15 = sand.u32 1, %s4055_s24   ;;  %p5414_p12 = scmp.ne.s32.totalorder %s5315_s8, 0 }
 0x5c9   : > { %p5415_p9 = scmp.ge.s32.totalorder %s4067_s27, 2  ;;  %s2571_s29 = scalar_lea.sflag [#allocation4], %s2570_s15 }
 0x5cb   : > { %p3551_p13 = pnand %p5415_p9, %p5414_p12 }
 0x5cd   : > { %p3552_p0 = pneg %p3551_p13 }
 0x5cf   : > { %4050 = dma.done.wait (%p3552_p0), %s2571_s29, 4096  }
 0x5d0   : > { %4052 = vsyncadd (%p3552_p0), %s2571_s29, 4294963200  ;;  %p22_p2 = scmp.ge.s32.totalorder %s4207_s14, 4   ;;  %s5416_s24 = smov %s4059_s25 }
 0x5d1   : > { %s5417_s25 = smov %s4063_s26  ;;  %s5418_s26 = smov %s4217_s17 }
 0x5d2   : > { %s5419_s27 = smov %s4207_s14  ;;  %24 = sbr.rel (!%p22_p2) target bundleno = 9 (0x9), region = 111 }
 0x5d7   :  { %2576 = vsyncpa [#allocation3], 1 }
 0x5d8   :  { %2578 = vsyncpa [#allocation3 + $0x1], 1 }
 0x5d9   :  { %2579 = vsyncpa [#allocation6], 1 }
 0x5da   :  { %2580 = vsyncpa [#allocation9], 1 }
 0x5db   :  { %2581 = vsyncpa [#allocation4], 1 }
 0x5dc   :  { %2583 = vsyncpa [#allocation4 + $0x1], 1 }

</bundles_post_ra>
